<compile_context>
chip_gen: v7x
topology: tpu7x:2x2x1
jax: 0.10.0
libtpu: 0.0.40
codegen_flags: <defaults>
</compile_context>

<pallas_src>
import functools

import jax
import jax.numpy as jnp
from jax import lax
from jax.experimental import pallas as pl
from jax.experimental.pallas import tpu as pltpu


# --------------- Pallas kernel: fc1 + bias + ReLU + (dropout) + fc2 + bias ---------------

def fc_head_kernel(flat_ref, w1_ref, b1_ref, w2_ref, b2_ref, o_ref):
    # flat_ref: (N, F)   bf16  flattened pool+conv activations (PyTorch NCHW flatten order)
    # w1_ref:   (F, TJ)  bf16  fc1 weight tile, canonical (in, out) layout
    # b1_ref:   (1, TJ)  f32   fc1 bias tile
    # w2_ref:   (TJ, Kp) bf16  fc2 weight tile, canonical (in, out) layout, classes padded to 128
    # b2_ref:   (1, Kp)  f32   fc2 bias (zero-padded)
    # o_ref:    (N, Kp)  f32   output accumulator, resident across the hidden-dim grid
    j = pl.program_id(0)

    @pl.when(j == 0)
    def _init():
        # Start the accumulator at the (padded) fc2 bias.
        o_ref[...] = jnp.broadcast_to(b2_ref[...], o_ref.shape)

    h = jnp.dot(flat_ref[...], w1_ref[...],
                preferred_element_type=jnp.float32) + b1_ref[...]          # (N, TJ) f32
    h = jnp.maximum(h, 0.0)                                                # ReLU
    # Dropout(p=0.7): identity in eval mode.
    o_ref[...] += jnp.dot(h.astype(w2_ref.dtype), w2_ref[...],
                          preferred_element_type=jnp.float32)              # (N, Kp) f32


# ------------------------- host-side one-time weight prep -------------------------

def prepare_params(wc, bc, w1, b1, w2, b2):
    """One-time weight/layout prep (model-load time, not per call)."""
    K, Hid = w2.shape
    Kp = ((max(K, 128) + 127) // 128) * 128            # lane-dense class dim

    w2p = jnp.zeros((Kp, Hid), jnp.float32).at[:K].set(jnp.asarray(w2, jnp.float32))
    b2p = jnp.zeros((Kp,), jnp.float32).at[:K].set(jnp.asarray(b2, jnp.float32))

    return dict(
        wc=jnp.asarray(wc, jnp.float32),                                    # (128, C)
        bc=jnp.asarray(bc, jnp.float32),                                    # (128,)
        w1t=jnp.asarray(w1, jnp.float32).T.astype(jnp.bfloat16),            # (F, Hid) bf16
        b1=jnp.asarray(b1, jnp.float32).reshape(1, -1),                     # (1, Hid)
        w2t=w2p.T.astype(jnp.bfloat16),                                     # (Hid, Kp) bf16
        b2=b2p.reshape(1, -1),                                              # (1, Kp)
    )


# ------------------------- forward wrapper -------------------------

def aux_classifier_forward(x, params, *, num_classes, tile_h=512):
    """x: (N, C, H, W) float32 NCHW; params from prepare_params.  Returns (N, num_classes)."""
    N = x.shape[0]
    w1t, b1, w2t, b2 = params["w1t"], params["b1"], params["w2t"], params["b2"]
    F, Hid = w1t.shape
    Kp = w2t.shape[1]
    assert Hid % tile_h == 0
    n_tiles = Hid // tile_h

    # --- tiny XLA prologue: AvgPool2d(k=5, s=3) + 1x1 Conv2d + flatten (NCHW order) ---
    pooled = lax.reduce_window(x, 0.0, lax.add,
                               (1, 1, 5, 5), (1, 1, 3, 3), "VALID") * (1.0 / 25.0)
    conv = jnp.einsum("oc,nchw->nohw", params["wc"], pooled) + params["bc"][None, :, None, None]
    flat = conv.reshape(N, -1).astype(jnp.bfloat16)                          # (N, F)
    assert flat.shape[1] == F

    out_p = pl.pallas_call(
        fc_head_kernel,
        out_shape=jax.ShapeDtypeStruct((N, Kp), jnp.float32),
        grid_spec=pltpu.PrefetchScalarGridSpec(
            num_scalar_prefetch=0,
            grid=(n_tiles,),
            in_specs=[
                pl.BlockSpec((N, F), lambda j: (0, 0)),          # flat activations (bf16, tiny)
                pl.BlockSpec((F, tile_h), lambda j: (0, j)),     # fc1 weight tile (bf16, streamed)
                pl.BlockSpec((1, tile_h), lambda j: (0, j)),     # fc1 bias tile
                pl.BlockSpec((tile_h, Kp), lambda j: (j, 0)),    # fc2 weight tile (bf16)
                pl.BlockSpec((1, Kp), lambda j: (0, 0)),         # fc2 bias (padded)
            ],
            out_specs=pl.BlockSpec((N, Kp), lambda j: (0, 0)),   # resident accumulator
        ),
        compiler_params=pltpu.CompilerParams(
            dimension_semantics=("arbitrary",),                  # hidden dim is a reduction
        ),
    )(flat, w1t, b1, w2t, b2)

    return out_p[:, :num_classes]


# ------------------------- plain-JAX f32 reference -------------------------

def reference(x, wc, bc, w1, b1, w2, b2):
    pooled = lax.reduce_window(x, 0.0, lax.add,
                               (1, 1, 5, 5), (1, 1, 3, 3), "VALID") / 25.0
    conv = jnp.einsum("oc,nchw->nohw", wc, pooled) + bc[None, :, None, None]
    flat = conv.reshape(x.shape[0], -1)
    h = jnp.maximum(flat @ w1.T + b1, 0.0)
    return h @ w2.T + b2


# ------------------------- main -------------------------

if __name__ == "__main__":
    N, C, H, W = 2, 4, 16, 16     # avgpool(5,3): 16 -> 4, so 128*4*4 = 2048 = fc1 in_features
    num_classes = 10

    key = jax.random.PRNGKey(0)
    k_x, k_wc, k_bc, k_w1, k_b1, k_w2, k_b2 = jax.random.split(key, 7)

    x = jax.random.normal(k_x, (N, C, H, W), dtype=jnp.float32)

    # Parameters (PyTorch-shaped), deterministic synthetic init.
    wc = jax.random.normal(k_wc, (128, C), dtype=jnp.float32) * 0.05   # conv 1x1 weight (O, C)
    bc = jax.random.normal(k_bc, (128,), dtype=jnp.float32) * 0.05
    w1 = jax.random.normal(k_w1, (1024, 2048), dtype=jnp.float32) * 0.02
    b1 = jax.random.normal(k_b1, (1024,), dtype=jnp.float32) * 0.02
    w2 = jax.random.normal(k_w2, (num_classes, 1024), dtype=jnp.float32) * 0.02
    b2 = jax.random.normal(k_b2, (num_classes,), dtype=jnp.float32) * 0.02

    # One-time host-side weight prep (not part of the per-call path).
    params = prepare_params(wc, bc, w1, b1, w2, b2)

    fwd = jax.jit(functools.partial(aux_classifier_forward, num_classes=num_classes))
    out = jax.block_until_ready(fwd(x, params))
    ref = jax.block_until_ready(reference(x, wc, bc, w1, b1, w2, b2))

    assert out.shape == (N, num_classes), out.shape
    assert bool(jnp.all(jnp.isfinite(out)))
    assert bool(jnp.allclose(out, ref, rtol=1e-2, atol=1e-2)), \
        f"max abs diff {float(jnp.max(jnp.abs(out - ref)))}"

    print("KERNEL_OK")
</pallas_src>

<mosaic_0001>
module attributes {stable_mosaic.version = 11 : i64} {
  func.func @fc_head_kernel(%arg0: i32, %arg1: memref<2x2048xbf16, #tpu.memory_space<vmem>>, %arg2: memref<2048x512xbf16, #tpu.memory_space<vmem>>, %arg3: memref<1x512xf32, #tpu.memory_space<vmem>>, %arg4: memref<512x128xbf16, #tpu.memory_space<vmem>>, %arg5: memref<1x128xf32, #tpu.memory_space<vmem>>, %arg6: memref<2x128xf32, #tpu.memory_space<vmem>>) attributes {dimension_semantics = [#tpu.dimension_semantics<arbitrary>], iteration_bounds = array<i64: 2>, scalar_prefetch = 0 : i64, scratch_operands = 0 : i64, tpu.core_type = #tpu.core_type<tc>, window_params = [{pipeline_mode = #tpu.pipeline_mode<synchronous>, transform_indices = @transform_0, window_bounds = array<i64: 2, 2048>}, {transform_indices = @transform_1, window_bounds = array<i64: 2048, 512>}, {transform_indices = @transform_2, window_bounds = array<i64: 1, 512>}, {transform_indices = @transform_3, window_bounds = array<i64: 512, 128>}, {pipeline_mode = #tpu.pipeline_mode<synchronous>, transform_indices = @transform_4, window_bounds = array<i64: 1, 128>}, {pipeline_mode = #tpu.pipeline_mode<synchronous>, transform_indices = @transform_5, window_bounds = array<i64: 2, 128>}]} {
    %c0_i32 = arith.constant 0 : i32
    %0 = arith.cmpi eq, %arg0, %c0_i32 : i32
    %1 = arith.extui %0 : i1 to i32
    %c0_i32_0 = arith.constant 0 : i32
    %2 = arith.cmpi ne, %1, %c0_i32_0 : i32
    scf.if %2 {
      %c0_14 = arith.constant 0 : index
      %c0_15 = arith.constant 0 : index
      %17 = vector.load %arg5[%c0_14, %c0_15] : memref<1x128xf32, #tpu.memory_space<vmem>>, vector<1x128xf32>
      %18 = vector.shape_cast %17 : vector<1x128xf32> to vector<1x128xf32>
      %19 = vector.broadcast %18 : vector<1x128xf32> to vector<2x128xf32>
      %c0_16 = arith.constant 0 : index
      %c0_17 = arith.constant 0 : index
      %20 = vector.load %arg6[%c0_16, %c0_17] : memref<2x128xf32, #tpu.memory_space<vmem>>, vector<2x128xf32>
      tpu.vector_store %arg6[%c0_16, %c0_17], %19 {strides = array<i32>} : memref<2x128xf32, #tpu.memory_space<vmem>>, vector<2x128xf32>,
    } else {
    }
    %c0 = arith.constant 0 : index
    %c0_1 = arith.constant 0 : index
    %3 = vector.load %arg1[%c0, %c0_1] : memref<2x2048xbf16, #tpu.memory_space<vmem>>, vector<2x2048xbf16>
    %c0_2 = arith.constant 0 : index
    %c0_3 = arith.constant 0 : index
    %4 = vector.load %arg2[%c0_2, %c0_3] : memref<2048x512xbf16, #tpu.memory_space<vmem>>, vector<2048x512xbf16>
    %cst = arith.constant dense<0.000000e+00> : vector<2x512xf32>
    %5 = tpu.matmul %3, %4, %cst {dimension_numbers = #tpu.dot_dimension_numbers<[1], [0], [0], [1], [0, 0, 1, 1], [], []>} : vector<2x2048xbf16>, vector<2048x512xbf16>, vector<2x512xf32> -> vector<2x512xf32>
    %c0_4 = arith.constant 0 : index
    %c0_5 = arith.constant 0 : index
    %6 = vector.load %arg3[%c0_4, %c0_5] : memref<1x512xf32, #tpu.memory_space<vmem>>, vector<1x512xf32>
    %7 = vector.broadcast %6 : vector<1x512xf32> to vector<2x512xf32>
    %8 = arith.addf %5, %7 : vector<2x512xf32>
    %cst_6 = arith.constant 0.000000e+00 : f32
    %9 = vector.broadcast %cst_6 : f32 to vector<2x512xf32>
    %10 = arith.maximumf %8, %9 : vector<2x512xf32>
    %c0_7 = arith.constant 0 : index
    %c0_8 = arith.constant 0 : index
    %11 = vector.load %arg6[%c0_7, %c0_8] : memref<2x128xf32, #tpu.memory_space<vmem>>, vector<2x128xf32>
    %12 = arith.truncf %10 : vector<2x512xf32> to vector<2x512xbf16>
    %c0_9 = arith.constant 0 : index
    %c0_10 = arith.constant 0 : index
    %13 = vector.load %arg4[%c0_9, %c0_10] : memref<512x128xbf16, #tpu.memory_space<vmem>>, vector<512x128xbf16>
    %cst_11 = arith.constant dense<0.000000e+00> : vector<2x128xf32>
    %14 = tpu.matmul %12, %13, %cst_11 {dimension_numbers = #tpu.dot_dimension_numbers<[1], [0], [0], [1], [0, 0, 1, 1], [], []>} : vector<2x512xbf16>, vector<512x128xbf16>, vector<2x128xf32> -> vector<2x128xf32>
    %15 = arith.addf %11, %14 : vector<2x128xf32>
    %c0_12 = arith.constant 0 : index
    %c0_13 = arith.constant 0 : index
    %16 = vector.load %arg6[%c0_12, %c0_13] : memref<2x128xf32, #tpu.memory_space<vmem>>, vector<2x128xf32>
    tpu.vector_store %arg6[%c0_12, %c0_13], %15 {strides = array<i32>} : memref<2x128xf32, #tpu.memory_space<vmem>>, vector<2x128xf32>,
    return
  }
  func.func @transform_0(%arg0: i32) -> (i32, i32) {
    %c0_i32 = arith.constant 0 : i32
    %c0_i32_0 = arith.constant 0 : i32
    %c0_i32_1 = arith.constant 0 : i32
    return %c0_i32, %c0_i32_0 : i32, i32
  }
  func.func @transform_1(%arg0: i32) -> (i32, i32) {
    %c0_i32 = arith.constant 0 : i32
    %c0_i32_0 = arith.constant 0 : i32
    return %c0_i32, %arg0 : i32, i32
  }
  func.func @transform_2(%arg0: i32) -> (i32, i32) {
    %c0_i32 = arith.constant 0 : i32
    %c0_i32_0 = arith.constant 0 : i32
    return %c0_i32, %arg0 : i32, i32
  }
  func.func @transform_3(%arg0: i32) -> (i32, i32) {
    %c0_i32 = arith.constant 0 : i32
    %c0_i32_0 = arith.constant 0 : i32
    return %arg0, %c0_i32 : i32, i32
  }
  func.func @transform_4(%arg0: i32) -> (i32, i32) {
    %c0_i32 = arith.constant 0 : i32
    %c0_i32_0 = arith.constant 0 : i32
    %c0_i32_1 = arith.constant 0 : i32
    return %c0_i32, %c0_i32_0 : i32, i32
  }
  func.func @transform_5(%arg0: i32) -> (i32, i32) {
    %c0_i32 = arith.constant 0 : i32
    %c0_i32_0 = arith.constant 0 : i32
    %c0_i32_1 = arith.constant 0 : i32
    return %c0_i32, %c0_i32_0 : i32, i32
  }
}

</mosaic_0001>

<bundles_post_ra>
// kernel: aux_classifier_forward.1
= control target key start
LH: loop header
LB: loop body
LE: loop exit
PB: predicated region body
PF: predicated region fallthrough
CT: control target
= control target key end

     0   :  { %s7333_s0 = inlined_call_operand.vmem [shape: bf16[2,2048], index: 0, kind: input, shape index: {}]   ;;  %s7334_s1 = inlined_call_operand.hbm [shape: bf16[2048,1024], index: 1, kind: input, shape index: {}]   ;;  %s7335_s2 = inlined_call_operand.hbm [shape: f32[1,1024], index: 2, kind: input, shape index: {}]   ;;  %s7336_s3 = inlined_call_operand.hbm [shape: bf16[1024,128], index: 3, kind: input, shape index: {}]   ;;  %s7337_s4 = inlined_call_operand.hbm [shape: f32[1,128], index: 4, kind: input, shape index: {}]   ;;  %s7338_s5 = inlined_call_operand.hbm [shape: f32[2,128], index: 5, kind: output, shape index: {}]  }
   0x1   :  { %7346 = sst [smem:[#allocation15_spill]] %s7335_s2 }
   0x2   :  { %10 = vsyncpa [#allocation3], 0 }
   0x3   :  { %12 = vsyncpa [#allocation3 + $0x1], 0 }
   0x4   :  { %13 = vsyncpa [#allocation6], 0 }
   0x5   :  { %15 = vsyncpa [#allocation6 + $0x1], 0 }
   0x6   :  { %16 = vsyncpa [#allocation9], 0 }
   0x7   :  { %17 = vsyncpa [#allocation4], 0  ;;  %s6443_s18 = smov 0   ;;  %s6445_s19 = smov 0  }
   0x8   :  { %s6447_s20 = smov 0   ;;  %s6449_s21 = smov 0  }
   0x9 LB: > { %s6464_s22 = sadd.s32 1, %s6400_s21   ;;  %s51_s23 = sadd.s32 1, %s6396_s20  ;;  %s6400_s21 = sphi %s6449_s21, %s7364_s21   ;;  %s6396_s20 = sphi %s6447_s20, %s7363_s20   ;;  %s6392_s19 = sphi %s6445_s19, %s7362_s19   ;;  %s6388_s18 = sphi %s6443_s18, %s7361_s18  }
   0xa   : > { %s48_s24 = ssub.s32 %s6400_s21, %s6464_s22  ;;  %p58_p0 = scmp.ne.s32.totalorder %s6396_s20, %s6392_s19 }
   0xb   : > { %p49_p1 = scmp.eq.s32.totalorder %s48_s24, 0  ;;  %p59_p2 = scmp.eq.s32.totalorder %s6400_s21, 0 }
   0xc   : > { %p5364_p3 = scmp.lt.s32.totalorder %s6400_s21, 2  ;;  %s6477_s26 = sand.u32 1, %s6396_s20  }
   0xd   : > { %s6474_s25 = scalar_select %p49_p1, %s6396_s20, %s51_s23  }
   0xe   : > { %p60_p4 = por %p59_p2, %p58_p0  ;;  %s4664_s27 = sshll.u32 %s6477_s26, 12 }
   0xf   : > { %s217_s28 = sand.u32 1, %s6400_s21   ;;  %s4667_s30 = sshll.u32 %s6477_s26, 2 }
  0x10   : > { %p6481_p5 = pnand %p5364_p3, %p60_p4  ;;  %s5229_s6 = sshll.u32 %s6400_s21, 6 }
  0x11   : > { %s7348_s2 = sld [smem:[#allocation15_spill]]  ;;  %s221_s10 = scalar_lea.vmem [#allocation5], %s4667_s30 }
  0x12   : > { %s7347_s29 = scalar_select %p6481_p5, 1, 0 }
  0x13   : > { %s229_s11 = sshll.u32 %s221_s10, 4  ;;  %s6495_s13 = scalar_lea.sflag [#allocation6], %s217_s28  ;;  %s6492_s11 = int_to_ptr.vmem [resolvable:$true] %s229_s11 }
  0x14   : > { %p6501_p7 = pneg %p6481_p5 }
  0x16   : > { %s7349_s15 = scalar_select %p6501_p7, 1, 0 }
  0x17   : > { %s6490_s9 = scalar_lea.hbm %s7348_s2, %s5229_s6  ;;  %s6215_s23 = scalar_lea.hbm %s7348_s2, 128 }
  0x18   : > { %s6210_s14 = scalar_lea.hbm %s6490_s9, 64  ;;  %p6216_p10 = scmp.lt.u32.totalorder %s6490_s9, %s7348_s2 }
  0x19   : > { %p6211_p6 = scmp.ne.s32.totalorder %s6490_s9, %s6210_s14  ;;  %p6217_p11 = scmp.lt.u32.totalorder %s6215_s23, %s6210_s14 }
  0x1a   : > { %p6219_p13 = scmp.lt.u32.totalorder %s6210_s14, %s6490_s9 }
  0x1b   : > { %p6213_p8 = pnand %p6501_p7, %p6211_p6  ;;  %p6218_p12 = por %p6217_p11, %p6216_p10 }
  0x1d   : > { %p6214_p9 = pneg %p6213_p8  ;;  %p6220_p0 = por %p6219_p13, %p6218_p12 }
  0x1f   : > { %p6221_p1 = pnand %p6220_p0, %p6214_p9 }
  0x21   : > { %6224 = shalt.err (!%p6221_p1)
}
  0x22   : > { %s6225_s28 = scalar_lea.vmem %s6492_s11, 64  ;;  %s6402_s6 = smov [#allocation5]  }
  0x23   : > { %p6226_p2 = scmp.ne.s32.totalorder %s6492_s11, %s6225_s28  ;;  %s6230_s7 = sshll.u32 %s6402_s6, 4  ;;  %s6231_s7 = int_to_ptr.vmem [resolvable:$false] %s6230_s7 }
  0x24   : > { %s6232_s8 = scalar_lea.vmem %s6231_s7, 128  ;;  %p6233_p6 = scmp.lt.s32.totalorder %s6492_s11, %s6231_s7 }
  0x25   : > { %p6228_p3 = pnand %p6226_p2, %p6501_p7  ;;  %p6234_p8 = scmp.lt.s32.totalorder %s6232_s8, %s6225_s28 }
  0x27   : > { %p6229_p4 = pneg %p6228_p3  ;;  %p6235_p10 = por %p6234_p8, %p6233_p6 }
  0x29   : > { %p6236_p11 = pnand %p6235_p10, %p6229_p4 }
  0x2b   : > { %6239 = shalt.err (!%p6236_p11)
}
  0x2c   : > { %5359 = dma.hbm_to_vmem [thread:$0]  (!%p6481_p5), %s6490_s9, 64, %s6492_s11, %s6495_s13  }
  0x2d   : > { %s6526_s10 = sadd.s32 4294967295, %s6400_s21   ;;  %p64_p12 = scmp.ne.s32.totalorder %s6392_s19, %s6388_s18 }
  0x2e   : > { %p7339_p9 = scmp.eq.s32.totalorder %s6526_s10, 0  ;;  %p4661_p13 = scmp.ge.s32.totalorder %s6400_s21, 1 }
  0x2f   : > { %p169_p0 = scmp.lt.s32.totalorder %s6400_s21, 3  ;;  %s6403_s9 = smov [#allocation8]  }
  0x30   : > { %p6536_p2 = por %p7339_p9, %p64_p12  ;;  %s185_s11 = sshll.u32 %s6403_s9, 4  ;;  %s186_s11 = int_to_ptr.vmem [resolvable:$true] %s185_s11 }
  0x31   : > { %p6540_p3 = pnand %p4661_p13, %p169_p0  ;;  %s5228_s17 = sshll.u32 %s6400_s21, 8 }
  0x32   : > { %s7350_s14 = scalar_select %p6536_p2, 1, 0 }
  0x33   : > { %s7351_s16 = scalar_select %p6540_p3, 1, 0 }
  0x34   : > { %p5349_p4 = pneg %p6540_p3  ;;  %s200_s18 = scalar_lea.vmem [#allocation2], %s4664_s27 }
  0x35   : > { %s207_s23 = sshll.u32 %s200_s18, 4  ;;  %s6558_s6 = scalar_lea.hbm %s7334_s1, %s5228_s17  ;;  %s6560_s23 = int_to_ptr.vmem [resolvable:$true] %s207_s23 }
  0x36   : > { %p6551_p6 = pnand %p5349_p4, %p7339_p9  ;;  %s6240_s9 = scalar_lea.hbm %s7337_s4, 16 }
  0x37   : > { %p6241_p8 = scmp.ne.s32.totalorder %s7337_s4, %s6240_s9  ;;  %p6247_p13 = scmp.lt.u32.totalorder %s6240_s9, %s7337_s4 }
  0x38   : > { %p6242_p10 = pneg %p6551_p6 }
  0x3a   : > { %p6243_p11 = pnand %p6242_p10, %p6241_p8 }
  0x3c   : > { %p6244_p12 = pneg %p6243_p11 }
  0x3e   : > { %p6249_p0 = pnand %p6247_p13, %p6244_p12 }
  0x40   : > { %6252 = shalt.err (!%p6249_p0)
}
  0x41   : > { %s6253_s17 = scalar_lea.vmem %s186_s11, 16  ;;  %s6260_s30 = scalar_lea.vmem %s186_s11, 32 }
  0x42   : > { %p6254_p4 = scmp.ne.s32.totalorder %s186_s11, %s6253_s17  ;;  %p6261_p2 = scmp.lt.s32.totalorder %s186_s11, %s186_s11 }
  0x43   : > { %p6262_p3 = scmp.lt.s32.totalorder %s6260_s30, %s6253_s17 }
  0x44   : > { %p6256_p1 = pnand %p6254_p4, %p6242_p10 }
  0x45   : > { %p6263_p5 = por %p6262_p3, %p6261_p2 }
  0x46   : > { %p6257_p9 = pneg %p6256_p1 }
  0x48   : > { %p6264_p7 = pnand %p6263_p5, %p6257_p9 }
  0x4a   : > { %6267 = shalt.err (!%p6264_p7)
}
  0x4b   : > { %5352 = dma.hbm_to_vmem [thread:$0]  (!%p6551_p6), %s7337_s4, 16, %s186_s11, [#allocation9]  }
  0x4c   : > { %s197_s2 = scalar_lea.sflag [#allocation3], %s6477_s26  ;;  %s6268_s7 = scalar_lea.hbm %s6558_s6, 65536 }
  0x4d   : > { %p6269_p1 = scmp.ne.s32.totalorder %s6558_s6, %s6268_s7  ;;  %p7353_p8 = scmp.ne.s32.totalorder %s7349_s15, 0 }
  0x4e   : > { %s6273_s24 = scalar_lea.hbm %s7334_s1, 131072  ;;  %p6274_p5 = scmp.lt.u32.totalorder %s6558_s6, %s7334_s1 }
  0x4f   : > { %p6271_p10 = pnand %p6269_p1, %p7353_p8  ;;  %p6275_p7 = scmp.lt.u32.totalorder %s6273_s24, %s6268_s7 }
  0x50   : > { %p6277_p3 = scmp.lt.u32.totalorder %s6268_s7, %s6558_s6 }
  0x51   : > { %p6272_p2 = pneg %p6271_p10  ;;  %p6276_p9 = por %p6275_p7, %p6274_p5 }
  0x53   : > { %p6278_p11 = por %p6277_p3, %p6276_p9 }
  0x55   : > { %p6279_p12 = pnand %p6278_p11, %p6272_p2 }
  0x57   : > { %6282 = shalt.err (!%p6279_p12)
}
  0x58   : > { %s6283_s11 = scalar_lea.vmem %s6560_s23, 65536  ;;  %s6404_s17 = smov [#allocation2]  }
  0x59   : > { %p6284_p6 = scmp.ne.s32.totalorder %s6560_s23, %s6283_s11  ;;  %s6288_s30 = sshll.u32 %s6404_s17, 4  ;;  %s6289_s30 = int_to_ptr.vmem [resolvable:$false] %s6288_s30 }
  0x5a   : > { %s6290_s12 = scalar_lea.vmem %s6289_s30, 131072  ;;  %p6291_p4 = scmp.lt.s32.totalorder %s6560_s23, %s6289_s30 }
  0x5b   : > { %p6286_p13 = pnand %p6284_p6, %p7353_p8  ;;  %p6292_p1 = scmp.lt.s32.totalorder %s6290_s12, %s6283_s11 }
  0x5d   : > { %p6287_p0 = pneg %p6286_p13  ;;  %p6293_p10 = por %p6292_p1, %p6291_p4 }
  0x5f   : > { %p6294_p5 = pnand %p6293_p10, %p6287_p0 }
  0x61   : > { %6297 = shalt.err (!%p6294_p5)
}
  0x62   : > { %s6405_s28 = smov 512   ;;  %s6406_s7 = smov 256  }
  0x63   : > { %s6407_s8 = smov 16   ;;  %p7354_p2 = scmp.ne.s32.totalorder %s7347_s29, 0 }
  0x64   : > { %s5230_s9 = sshll.u32 %s6400_s21, 12  ;;  %s7355_s24 = sshll.u32 %s6477_s26, 8 }
  0x65   : > { %5356 = dma.hbm_to_vmem [thread:$0]  (!%p7354_p2), %s6558_s6, 65536, %s6560_s23, %s197_s2, %s6405_s28, %s6406_s7, %s6407_s8  }
  0x66   : > { %s240_s27 = scalar_lea.vmem [#allocation7], %s7355_s24  ;;  %s6608_s30 = scalar_lea.hbm %s7336_s3, %s5230_s9 }
  0x67   : > { %s247_s18 = sshll.u32 %s240_s27, 4  ;;  %s6298_s12 = scalar_lea.hbm %s6608_s30, 4096  ;;  %s6610_s18 = int_to_ptr.vmem [resolvable:$true] %s247_s18 }
  0x68   : > { %p6299_p7 = scmp.ne.s32.totalorder %s6608_s30, %s6298_s12  ;;  %s6303_s23 = scalar_lea.hbm %s7336_s3, 8192 }
  0x69   : > { %p6304_p11 = scmp.lt.u32.totalorder %s6608_s30, %s7336_s3  ;;  %p6305_p12 = scmp.lt.u32.totalorder %s6303_s23, %s6298_s12 }
  0x6a   : > { %p6301_p9 = pnand %p6299_p7, %p7353_p8  ;;  %p6307_p13 = scmp.lt.u32.totalorder %s6298_s12, %s6608_s30 }
  0x6b   : > { %p6306_p6 = por %p6305_p12, %p6304_p11 }
  0x6c   : > { %p6302_p3 = pneg %p6301_p9 }
  0x6d   : > { %p6308_p0 = por %p6307_p13, %p6306_p6 }
  0x6f   : > { %p6309_p4 = pnand %p6308_p0, %p6302_p3 }
  0x71   : > { %6312 = shalt.err (!%p6309_p4)
}
  0x72   : > { %s6313_s28 = scalar_lea.vmem %s6610_s18, 4096  ;;  %s6408_s7 = smov [#allocation7]  }
  0x73   : > { %p6314_p1 = scmp.ne.s32.totalorder %s6610_s18, %s6313_s28  ;;  %s6318_s8 = sshll.u32 %s6408_s7, 4  ;;  %s6319_s8 = int_to_ptr.vmem [resolvable:$false] %s6318_s8 }
  0x74   : > { %s6320_s9 = scalar_lea.vmem %s6319_s8, 8192  ;;  %p6321_p7 = scmp.lt.s32.totalorder %s6610_s18, %s6319_s8 }
  0x75   : > { %p6316_p10 = pnand %p6314_p1, %p7353_p8  ;;  %p6322_p9 = scmp.lt.s32.totalorder %s6320_s9, %s6313_s28 }
  0x77   : > { %p6317_p5 = pneg %p6316_p10  ;;  %p6323_p11 = por %p6322_p9, %p6321_p7 }
  0x79   : > { %p6324_p12 = pnand %p6323_p11, %p6317_p5 }
  0x7b   : > { %6327 = shalt.err (!%p6324_p12)
}
  0x7c   : > { %s6409_s24 = smov 64   ;;  %s6410_s27 = smov 4  }
  0x7d   : > { %5362 = dma.hbm_to_vmem [thread:$0]  (!%p7354_p2), %s6608_s30, 4096, %s6610_s18, %s6495_s13, %s6409_s24, %s6409_s24, %s6410_s27  }
  0x7e   : > { %p7356_p8 = scmp.ne.s32.totalorder %s7351_s16, 0 }
  0x7f   : > { %s261_s15 = sand.u32 (!%p7356_p8), 1, %s6392_s19   ;;  %p7357_p3 = scmp.ne.s32.totalorder (!%p7356_p8), %s7350_s14, 0 }
  0x80   : > { %259 = sbr.rel (%p7356_p8) target bundleno = 1118 (0x45e), region = 40  ;;  %s4674_s11 = sshll.u32 (!%p7356_p8), %s261_s15, 12 }
  0x81   : > { %s262_s17 = scalar_lea.sflag (!%p7356_p8), [#allocation3], %s261_s15  ;;  %s6637_s12 = scalar_lea.vmem (!%p7356_p8), [#allocation2], %s4674_s11 }
  0x87   : > { %6371 = dma.done.wait (%p7357_p3), %s262_s17, 65536  }
  0x88   : > { %6373 = vsyncadd (%p7357_p3), %s262_s17, 4294901760  ;;  %s270_s21 = sand.u32 1, %s6526_s10   ;;  %s4675_s29 = sshll.u32 %s261_s15, 2 }
  0x89   : > { %s271_s13 = scalar_lea.sflag [#allocation6], %s270_s21  ;;  %s6644_s18 = scalar_lea.vmem [#allocation5], %s4675_s29 }
  0x8a   : > { %6375 = dma.done.wait (%p7357_p3), %s271_s13, 4160  }
  0x8b   : > { %6377 = vsyncadd (%p7357_p3), %s271_s13, 4294963136  ;;  %s4676_s16 = sshll.u32 %s261_s15, 8  ;;  %p7358_p2 = scmp.eq.s32.totalorder %s6526_s10, 0 }
  0x8c   : > { %s6650_s30 = scalar_lea.vmem [#allocation7], %s4676_s16 }
  0x8d   : > { %6379 = dma.done.wait (%p7358_p2), [#allocation9], 16   ;;  %p7359_p6 = pmov %p7358_p2 }
  0x8e   : > { %p7360_p13 = scmp.ne.s32.totalorder %s6526_s10, 0 }
  0x8f   : > { %6381 = vsyncadd (%p7359_p6), [#allocation9], 4294967280  ;;  %v4679_v0 = vld [vmem:[#allocation8] ss:$0 sm:$0xff] (!%p7360_p13) }
  0x90   : > { %326 = sbr.rel (%p7360_p13) target bundleno = 151 (0x97), region = 60  ;;  %334 = vst [vmem:[#allocation10] sm:$0x3] (!%p7360_p13), %v4679_v0 }
  0x97 PF: > { %v5408_v1 = vld [vmem:[%s6637_s12 + $0x4] ss:$16 sps:$4 sm:$0xff]   ;;  %v5410_v2 = vld [vmem:[%s6637_s12 + $0xc] ss:$16 sps:$4 sm:$0xff]   ;;  %v5412_v3 = vld [vmem:[%s6637_s12] ss:$16 sps:$4 sm:$0xff]   ;;  %v851_v37 = vlaneseq }
  0x98   : > { %3547 = vmatprep.subr.bf16.mxu0 %v5408_v1  ;;  %v5413_v4 = vld [vmem:[%s6637_s12 + $0x8] ss:$16 sps:$4 sm:$0xff]   ;;  %3875 = vmatprep.subr.bf16.mxu1 %v5410_v2  ;;  %v5414_v5 = vld [vmem:[%s6637_s12 + $0x24] ss:$16 sps:$4 sm:$0xff]   ;;  %v5416_v6 = vld [vmem:[%s6637_s12 + $0x2c] ss:$16 sps:$4 sm:$0xff]  }
  0x99   : > { %3548 = vmatpush1.bf16.msra.mxu0 %v5412_v3  ;;  %3876 = vmatpush1.bf16.msra.mxu1 %v5413_v4  ;;  %v5418_v7 = vld [vmem:[%s6637_s12 + $0x20] ss:$16 sps:$4 sm:$0xff]   ;;  %v5419_v8 = vld [vmem:[%s6637_s12 + $0x28] ss:$16 sps:$4 sm:$0xff]   ;;  %v5420_v9 = vld [vmem:[%s6637_s12 + $0x44] ss:$16 sps:$4 sm:$0xff]  }
  0x9a   : > { %3549 = vmatprep.subr.bf16.mxu0 %v5414_v5  ;;  %3877 = vmatprep.subr.bf16.mxu1 %v5416_v6  ;;  %v5422_v10 = vld [vmem:[%s6637_s12 + $0x4c] ss:$16 sps:$4 sm:$0xff]   ;;  %v5424_v11 = vld [vmem:[%s6637_s12 + $0x40] ss:$16 sps:$4 sm:$0xff]   ;;  %v5425_v12 = vld [vmem:[%s6637_s12 + $0x48] ss:$16 sps:$4 sm:$0xff]  }
  0x9b   : > { %v5426_v13 = vld [vmem:[%s6637_s12 + $0x64] ss:$16 sps:$4 sm:$0xff]   ;;  %v5428_v14 = vld [vmem:[%s6637_s12 + $0x6c] ss:$16 sps:$4 sm:$0xff]   ;;  %v5430_v15 = vld [vmem:[%s6637_s12 + $0x60] ss:$16 sps:$4 sm:$0xff]  }
  0x9c   : > { %v5431_v16 = vld [vmem:[%s6637_s12 + $0x68] ss:$16 sps:$4 sm:$0xff]   ;;  %v5432_v17 = vld [vmem:[%s6637_s12 + $0x84] ss:$16 sps:$4 sm:$0xff]   ;;  %v5434_v18 = vld [vmem:[%s6637_s12 + $0x8c] ss:$16 sps:$4 sm:$0xff]  }
  0x9d   : > { %3550 = vmatpush1.bf16.msra.mxu0 %v5418_v7  ;;  %3878 = vmatpush1.bf16.msra.mxu1 %v5419_v8  ;;  %v5436_v19 = vld [vmem:[%s6637_s12 + $0x80] ss:$16 sps:$4 sm:$0xff]   ;;  %v5437_v20 = vld [vmem:[%s6637_s12 + $0x88] ss:$16 sps:$4 sm:$0xff]   ;;  %v5438_v21 = vld [vmem:[%s6637_s12 + $0xa4] ss:$16 sps:$4 sm:$0xff]  }
  0x9e   : > { %3551 = vmatprep.subr.bf16.mxu0 %v5420_v9  ;;  %3879 = vmatprep.subr.bf16.mxu1 %v5422_v10  ;;  %v5440_v22 = vld [vmem:[%s6637_s12 + $0xac] ss:$16 sps:$4 sm:$0xff]   ;;  %v5442_v23 = vld [vmem:[%s6637_s12 + $0xa0] ss:$16 sps:$4 sm:$0xff]   ;;  %v5443_v24 = vld [vmem:[%s6637_s12 + $0xa8] ss:$16 sps:$4 sm:$0xff]  }
  0x9f   : > { %v5444_v25 = vld [vmem:[%s6637_s12 + $0xc4] ss:$16 sps:$4 sm:$0xff]   ;;  %v5446_v26 = vld [vmem:[%s6637_s12 + $0xcc] ss:$16 sps:$4 sm:$0xff]   ;;  %v5448_v27 = vld [vmem:[%s6637_s12 + $0xc0] ss:$16 sps:$4 sm:$0xff]  }
  0xa0   : > { %v5449_v28 = vld [vmem:[%s6637_s12 + $0xc8] ss:$16 sps:$4 sm:$0xff]   ;;  %v5450_v29 = vld [vmem:[%s6637_s12 + $0xe4] ss:$16 sps:$4 sm:$0xff]   ;;  %v5452_v30 = vld [vmem:[%s6637_s12 + $0xec] ss:$16 sps:$4 sm:$0xff]  }
  0xa1   : > { %3552 = vmatpush1.bf16.msra.mxu0 %v5424_v11  ;;  %3880 = vmatpush1.bf16.msra.mxu1 %v5425_v12  ;;  %v5454_v31 = vld [vmem:[%s6637_s12 + $0xe0] ss:$16 sps:$4 sm:$0xff]   ;;  %v5455_v32 = vld [vmem:[%s6637_s12 + $0xe8] ss:$16 sps:$4 sm:$0xff]   ;;  %v5456_v33 = vld [vmem:[%s6637_s12 + $0x104] ss:$16 sps:$4 sm:$0xff]  }
  0xa2   : > { %3553 = vmatprep.subr.bf16.mxu0 %v5426_v13  ;;  %3881 = vmatprep.subr.bf16.mxu1 %v5428_v14  ;;  %v5458_v34 = vld [vmem:[%s6637_s12 + $0x10c] ss:$16 sps:$4 sm:$0xff]   ;;  %v5460_v35 = vld [vmem:[%s6637_s12 + $0x100] ss:$16 sps:$4 sm:$0xff]   ;;  %v5461_v36 = vld [vmem:[%s6637_s12 + $0x108] ss:$16 sps:$4 sm:$0xff]  }
  0xa3   : > { %v6411_v38 = vmov 1966171168   ;;  %v5462_v40 = vld [vmem:[%s6637_s12 + $0x124] ss:$16 sps:$4 sm:$0xff]   ;;  %v5464_v41 = vld [vmem:[%s6637_s12 + $0x12c] ss:$16 sps:$4 sm:$0xff]  }
  0xa4   : > { %v875_v39 = vunpack.c.l.s4 %v6411_v38  ;;  %v5466_v42 = vld [vmem:[%s6637_s12 + $0x120] ss:$16 sps:$4 sm:$0xff]   ;;  %v6697_v43 = vshrl.u32 %v851_v37, 7  ;;  %v5467_v45 = vld [vmem:[%s6637_s12 + $0x128] ss:$16 sps:$4 sm:$0xff]   ;;  %s6412_s2 = smov [#allocation10]  }
  0xa5   : > { %3554 = vmatpush1.bf16.msra.mxu0 %v5430_v15  ;;  %3882 = vmatpush1.bf16.msra.mxu1 %v5431_v16  ;;  %v5468_v46 = vld [vmem:[%s6637_s12 + $0x144] ss:$16 sps:$4 sm:$0xff]   ;;  %v5470_v47 = vld [vmem:[%s6637_s12 + $0x14c] ss:$16 sps:$4 sm:$0xff]   ;;  %v5472_v48 = vld [vmem:[%s6637_s12 + $0x140] ss:$16 sps:$4 sm:$0xff]  }
  0xa6   : > { %3555 = vmatprep.subr.bf16.mxu0 %v5432_v17  ;;  %3883 = vmatprep.subr.bf16.mxu1 %v5434_v18  ;;  %v876_v44 = vunpack.c.0.s8 %v875_v39  ;;  %v5473_v49 = vld [vmem:[%s6637_s12 + $0x148] ss:$16 sps:$4 sm:$0xff]   ;;  %v5474_v51 = vld [vmem:[%s6637_s12 + $0x164] ss:$16 sps:$4 sm:$0xff]   ;;  %v5476_v52 = vld [vmem:[%s6637_s12 + $0x16c] ss:$16 sps:$4 sm:$0xff]  }
  0xa7   : > { %v6712_v53 = vld [vmem:[%s7333_s0] sm:$0xff]  ;;  %v5478_v54 = vld [vmem:[%s6637_s12 + $0x160] ss:$16 sps:$4 sm:$0xff]   ;;  %v5480_v57 = vld [vmem:[%s6637_s12 + $0x184] ss:$16 sps:$4 sm:$0xff]   ;;  %s4557_s28 = sshll.u32 %s6412_s2, 4  ;;  %s4558_s28 = int_to_ptr.vmem [resolvable:$true] %s4557_s28 }
  0xa8   : > { %v6705_v50 = vsub.s32 %v876_v44, %v6697_v43  ;;  %v5479_v56 = vld [vmem:[%s6637_s12 + $0x168] ss:$16 sps:$4 sm:$0xff]   ;;  %v5482_v58 = vld [vmem:[%s6637_s12 + $0x18c] ss:$16 sps:$4 sm:$0xff]   ;;  %v5484_v60 = vld [vmem:[%s6637_s12 + $0x180] ss:$16 sps:$4 sm:$0xff]   ;;  %p6335_p5 = scmp.lt.s32.totalorder %s4558_s28, %s4558_s28 }
  0xa9   : > { %3556 = vmatpush1.bf16.msra.mxu0 %v5436_v19  ;;  %3884 = vmatpush1.bf16.msra.mxu1 %v5437_v20  ;;  %v5485_v62 = vld [vmem:[%s6637_s12 + $0x188] ss:$16 sps:$4 sm:$0xff]   ;;  %v5486_v63 = vld [vmem:[%s6637_s12 + $0x1a4] ss:$16 sps:$4 sm:$0xff]   ;;  %v5488_v0 = vld [vmem:[%s6637_s12 + $0x1ac] ss:$16 sps:$4 sm:$0xff]  }
  0xaa   : > { %3557 = vmatprep.subr.bf16.mxu0 %v5438_v21  ;;  %3885 = vmatprep.subr.bf16.mxu1 %v5440_v22  ;;  %v880_v55 = vrot.slane %v6712_v53, %v6705_v50  ;;  %v5490_v1 = vld [vmem:[%s6637_s12 + $0x1a0] ss:$16 sps:$4 sm:$0xff]   ;;  %v5491_v2 = vld [vmem:[%s6637_s12 + $0x1a8] ss:$16 sps:$4 sm:$0xff]   ;;  %v5492_v3 = vld [vmem:[%s6637_s12 + $0x1c4] ss:$16 sps:$4 sm:$0xff]  }
  0xab   : > { %v5494_v4 = vld [vmem:[%s6637_s12 + $0x1cc] ss:$16 sps:$4 sm:$0xff]   ;;  %v5496_v5 = vld [vmem:[%s6637_s12 + $0x1c0] ss:$16 sps:$4 sm:$0xff]   ;;  %v5497_v6 = vld [vmem:[%s6637_s12 + $0x1c8] ss:$16 sps:$4 sm:$0xff]  }
  0xac   : > { %v888_v59 = vcombine.high %v880_v55, %v880_v55  ;;  %v5498_v7 = vld [vmem:[%s6637_s12 + $0x1e4] ss:$16 sps:$4 sm:$0xff]   ;;  %v5500_v8 = vld [vmem:[%s6637_s12 + $0x1ec] ss:$16 sps:$4 sm:$0xff]   ;;  %v5502_v9 = vld [vmem:[%s6637_s12 + $0x1e0] ss:$16 sps:$4 sm:$0xff]   ;;  %v6739_v14 = vrot.slane %v880_v55, %v6705_v50 }
  0xad   : > { %3558 = vmatpush1.bf16.msra.mxu0 %v5442_v23  ;;  %3886 = vmatpush1.bf16.msra.mxu1 %v5443_v24  ;;  %v5503_v10 = vld [vmem:[%s6637_s12 + $0x1e8] ss:$16 sps:$4 sm:$0xff]   ;;  %v5506_v11 = vld [vmem:[%s6637_s12 + $0x204] ss:$16 sps:$4 sm:$0xff]   ;;  %v5509_v12 = vld [vmem:[%s6637_s12 + $0x20c] ss:$16 sps:$4 sm:$0xff]  }
  0xae   : > { %3559 = vmatprep.subr.bf16.mxu0 %v5444_v25  ;;  %3887 = vmatprep.subr.bf16.mxu1 %v5446_v26  ;;  %v910_v61 = vrot.slane %v888_v59, %v6705_v50  ;;  %v5504_v13 = vld [vmem:[%s6637_s12 + $0x200] ss:$16 sps:$4 sm:$0xff]   ;;  %v5507_v15 = vld [vmem:[%s6637_s12 + $0x208] ss:$16 sps:$4 sm:$0xff]   ;;  %v5512_v16 = vld [vmem:[%s6637_s12 + $0x224] ss:$16 sps:$4 sm:$0xff]  }
  0xaf   : > { %v5515_v17 = vld [vmem:[%s6637_s12 + $0x22c] ss:$16 sps:$4 sm:$0xff]   ;;  %v5510_v19 = vld [vmem:[%s6637_s12 + $0x220] ss:$16 sps:$4 sm:$0xff]   ;;  %v5513_v20 = vld [vmem:[%s6637_s12 + $0x228] ss:$16 sps:$4 sm:$0xff]  }
  0xb0   : > { %3579 = vmatprep.mubr.bf16.mxu0 %v910_v61  ;;  %3907 = vmatprep.mubr.bf16.mxu1 %v910_v61  ;;  %v920_v18 = vcombine.high %v910_v61, %v910_v61  ;;  %v5518_v21 = vld [vmem:[%s6637_s12 + $0x244] ss:$16 sps:$4 sm:$0xff]   ;;  %v5521_v22 = vld [vmem:[%s6637_s12 + $0x24c] ss:$16 sps:$4 sm:$0xff]   ;;  %v5516_v23 = vld [vmem:[%s6637_s12 + $0x240] ss:$16 sps:$4 sm:$0xff]  }
  0xb1   : > { %3560 = vmatpush1.bf16.msra.mxu0 %v5448_v27  ;;  %3888 = vmatpush1.bf16.msra.mxu1 %v5449_v28  ;;  %v5519_v24 = vld [vmem:[%s6637_s12 + $0x248] ss:$16 sps:$4 sm:$0xff]   ;;  %v5524_v25 = vld [vmem:[%s6637_s12 + $0x264] ss:$16 sps:$4 sm:$0xff]   ;;  %v5527_v26 = vld [vmem:[%s6637_s12 + $0x26c] ss:$16 sps:$4 sm:$0xff]  }
  0xb2   : > { %3561 = vmatprep.subr.bf16.mxu0 %v5450_v29  ;;  %3889 = vmatprep.subr.bf16.mxu1 %v5452_v30  ;;  %v5522_v27 = vld [vmem:[%s6637_s12 + $0x260] ss:$16 sps:$4 sm:$0xff]   ;;  %v5525_v28 = vld [vmem:[%s6637_s12 + $0x268] ss:$16 sps:$4 sm:$0xff]   ;;  %v5530_v29 = vld [vmem:[%s6637_s12 + $0x284] ss:$16 sps:$4 sm:$0xff]  }
  0xb3   : > { %v5533_v30 = vld [vmem:[%s6637_s12 + $0x28c] ss:$16 sps:$4 sm:$0xff]   ;;  %v5542_v37 = vld [vmem:[%s6637_s12 + $0x2c4] ss:$16 sps:$4 sm:$0xff]   ;;  %v5540_v39 = vld [vmem:[%s6637_s12 + $0x2c0] ss:$16 sps:$4 sm:$0xff]  }
  0xb4   : > { %v5545_v38 = vld [vmem:[%s6637_s12 + $0x2cc] ss:$16 sps:$4 sm:$0xff]   ;;  %v5546_v44 = vld [vmem:[%s6637_s12 + $0x2e0] ss:$16 sps:$4 sm:$0xff]   ;;  %v5561_v55 = vld [vmem:[%s6637_s12 + $0x328] ss:$16 sps:$4 sm:$0xff]  }
  0xb5   : > { %3562 = vmatpush1.bf16.msra.mxu0 %v5454_v31  ;;  %3890 = vmatpush1.bf16.msra.mxu1 %v5455_v32  ;;  %v5528_v31 = vld [vmem:[%s6637_s12 + $0x280] ss:$16 sps:$4 sm:$0xff]   ;;  %v5531_v32 = vld [vmem:[%s6637_s12 + $0x288] ss:$16 sps:$4 sm:$0xff]   ;;  %v5575_v61 = vld [vmem:[%s6637_s12 + $0x36c] ss:$16 sps:$4 sm:$0xff]  }
  0xb6   : > { %3563 = vmatprep.subr.bf16.mxu0 %v5456_v33  ;;  %3891 = vmatprep.subr.bf16.mxu1 %v5458_v34  ;;  %v5536_v33 = vld [vmem:[%s6637_s12 + $0x2a4] ss:$16 sps:$4 sm:$0xff]   ;;  %v5539_v34 = vld [vmem:[%s6637_s12 + $0x2ac] ss:$16 sps:$4 sm:$0xff]   ;;  %v5567_v59 = vld [vmem:[%s6637_s12 + $0x348] ss:$16 sps:$4 sm:$0xff]  }
  0xb7   : > { %p5366_p0 = scmp.eq.s32.totalorder %s6526_s10, 1  ;;  %s6328_s7 = scalar_lea.vmem %s4558_s28, 32 }
  0xb8   : > { %p6329_p4 = scmp.ne.s32.totalorder %s4558_s28, %s6328_s7  ;;  %p6336_p7 = scmp.lt.s32.totalorder %s6328_s7, %s6328_s7 }
  0xb9   : > { %3564 = vmatpush1.bf16.msra.mxu0 %v5460_v35  ;;  %3892 = vmatpush1.bf16.msra.mxu1 %v5461_v36  ;;  %v5534_v35 = vld [vmem:[%s6637_s12 + $0x2a0] ss:$16 sps:$4 sm:$0xff]   ;;  %v5537_v36 = vld [vmem:[%s6637_s12 + $0x2a8] ss:$16 sps:$4 sm:$0xff]  }
  0xba   : > { %3565 = vmatprep.subr.bf16.mxu0 %v5462_v40  ;;  %3893 = vmatprep.subr.bf16.mxu1 %v5464_v41  ;;  %v5543_v40 = vld [vmem:[%s6637_s12 + $0x2c8] ss:$16 sps:$4 sm:$0xff]   ;;  %v5548_v41 = vld [vmem:[%s6637_s12 + $0x2e4] ss:$16 sps:$4 sm:$0xff]   ;;  %p6330_p1 = pnand %p6329_p4, %p5366_p0  ;;  %p6337_p9 = por %p6336_p7, %p6335_p5 }
  0xbc   : > { %p6331_p10 = pneg %p6330_p1 }
  0xbd   : > { %3566 = vmatpush1.bf16.msra.mxu0 %v5466_v42  ;;  %3894 = vmatpush1.bf16.msra.mxu1 %v5467_v45  ;;  %v5551_v42 = vld [vmem:[%s6637_s12 + $0x2ec] ss:$16 sps:$4 sm:$0xff]   ;;  %v5549_v45 = vld [vmem:[%s6637_s12 + $0x2e8] ss:$16 sps:$4 sm:$0xff]  }
  0xbe   : > { %3567 = vmatprep.subr.bf16.mxu0 %v5468_v46  ;;  %3895 = vmatprep.subr.bf16.mxu1 %v5470_v47  ;;  %v5554_v46 = vld [vmem:[%s6637_s12 + $0x304] ss:$16 sps:$4 sm:$0xff]   ;;  %v5557_v47 = vld [vmem:[%s6637_s12 + $0x30c] ss:$16 sps:$4 sm:$0xff]   ;;  %p6338_p11 = pnand %p6337_p9, %p6331_p10 }
  0xc1   : > { %3568 = vmatpush1.bf16.msra.mxu0 %v5472_v48  ;;  %3896 = vmatpush1.bf16.msra.mxu1 %v5473_v49  ;;  %v5552_v48 = vld [vmem:[%s6637_s12 + $0x300] ss:$16 sps:$4 sm:$0xff]   ;;  %v5555_v49 = vld [vmem:[%s6637_s12 + $0x308] ss:$16 sps:$4 sm:$0xff]  }
  0xc2   : > { %3569 = vmatprep.subr.bf16.mxu0 %v5474_v51  ;;  %3897 = vmatprep.subr.bf16.mxu1 %v5476_v52  ;;  %v5560_v51 = vld [vmem:[%s6637_s12 + $0x324] ss:$16 sps:$4 sm:$0xff]   ;;  %v5563_v52 = vld [vmem:[%s6637_s12 + $0x32c] ss:$16 sps:$4 sm:$0xff]  }
  0xc5   : > { %3570 = vmatpush1.bf16.msra.mxu0 %v5478_v54  ;;  %3898 = vmatpush1.bf16.msra.mxu1 %v5479_v56  ;;  %v5558_v54 = vld [vmem:[%s6637_s12 + $0x320] ss:$16 sps:$4 sm:$0xff]   ;;  %v5566_v56 = vld [vmem:[%s6637_s12 + $0x344] ss:$16 sps:$4 sm:$0xff]  }
  0xc6   : > { %3571 = vmatprep.subr.bf16.mxu0 %v5480_v57  ;;  %3899 = vmatprep.subr.bf16.mxu1 %v5482_v58  ;;  %v5569_v57 = vld [vmem:[%s6637_s12 + $0x34c] ss:$16 sps:$4 sm:$0xff]   ;;  %v5564_v58 = vld [vmem:[%s6637_s12 + $0x340] ss:$16 sps:$4 sm:$0xff]  }
  0xc9   : > { %3572 = vmatpush1.bf16.msra.mxu0 %v5484_v60  ;;  %3900 = vmatpush1.bf16.msra.mxu1 %v5485_v62  ;;  %v5572_v60 = vld [vmem:[%s6637_s12 + $0x364] ss:$16 sps:$4 sm:$0xff]   ;;  %v5570_v62 = vld [vmem:[%s6637_s12 + $0x360] ss:$16 sps:$4 sm:$0xff]  }
  0xca   : > { %3573 = vmatprep.subr.bf16.mxu0 %v5486_v63  ;;  %3901 = vmatprep.subr.bf16.mxu1 %v5488_v0  ;;  %v5573_v63 = vld [vmem:[%s6637_s12 + $0x368] ss:$16 sps:$4 sm:$0xff]   ;;  %v5578_v0 = vld [vmem:[%s6637_s12 + $0x384] ss:$16 sps:$4 sm:$0xff]  }
  0xcd   : > { %3574 = vmatpush1.bf16.msra.mxu0 %v5490_v1  ;;  %3902 = vmatpush1.bf16.msra.mxu1 %v5491_v2  ;;  %v5581_v1 = vld [vmem:[%s6637_s12 + $0x38c] ss:$16 sps:$4 sm:$0xff]   ;;  %v5576_v2 = vld [vmem:[%s6637_s12 + $0x380] ss:$16 sps:$4 sm:$0xff]  }
  0xce   : > { %3575 = vmatprep.subr.bf16.mxu0 %v5492_v3  ;;  %3903 = vmatprep.subr.bf16.mxu1 %v5494_v4  ;;  %v5579_v3 = vld [vmem:[%s6637_s12 + $0x388] ss:$16 sps:$4 sm:$0xff]   ;;  %v5584_v4 = vld [vmem:[%s6637_s12 + $0x3a4] ss:$16 sps:$4 sm:$0xff]  }
  0xd1   : > { %3576 = vmatpush1.bf16.msra.mxu0 %v5496_v5  ;;  %3904 = vmatpush1.bf16.msra.mxu1 %v5497_v6  ;;  %v5587_v5 = vld [vmem:[%s6637_s12 + $0x3ac] ss:$16 sps:$4 sm:$0xff]   ;;  %v5582_v6 = vld [vmem:[%s6637_s12 + $0x3a0] ss:$16 sps:$4 sm:$0xff]  }
  0xd2   : > { %3577 = vmatprep.subr.bf16.mxu0 %v5498_v7  ;;  %3905 = vmatprep.subr.bf16.mxu1 %v5500_v8  ;;  %v5585_v7 = vld [vmem:[%s6637_s12 + $0x3a8] ss:$16 sps:$4 sm:$0xff]   ;;  %v5590_v8 = vld [vmem:[%s6637_s12 + $0x3c4] ss:$16 sps:$4 sm:$0xff]  }
  0xd5   : > { %3578 = vmatpush1.bf16.msra.mxu0 %v5502_v9  ;;  %3906 = vmatpush1.bf16.msra.mxu1 %v5503_v10  ;;  %v5593_v9 = vld [vmem:[%s6637_s12 + $0x3cc] ss:$16 sps:$4 sm:$0xff]   ;;  %v873_v10 = vcombine.high %v6712_v53, %v6712_v53  ;;  %v5597_v53 = vld [vmem:[%s6637_s12 + $0x3e8] ss:$16 sps:$4 sm:$0xff]  }
  0xd6   : > { %3588 = vmatprep.subr.bf16.mxu0 %v5506_v11  ;;  %3916 = vmatprep.subr.bf16.mxu1 %v5509_v12  ;;  %v5588_v11 = vld [vmem:[%s6637_s12 + $0x3c0] ss:$16 sps:$4 sm:$0xff]   ;;  %v5591_v12 = vld [vmem:[%s6637_s12 + $0x3c8] ss:$16 sps:$4 sm:$0xff]  }
  0xd8   : > { %3580 = vmatmul.mubr.bf16.vlgmr.msra.gmra.mrb[0].mxu0 %v6739_v14  ;;  %3908 = vmatmul.mubr.bf16.vlgmr.msra.gmra.mrb[0].mxu1 %v6739_v14 }
  0xd9   : > { %3589 = vmatpush1.bf16.msra.mxu0 %v5504_v13  ;;  %3917 = vmatpush1.bf16.msra.mxu1 %v5507_v15  ;;  %v5596_v13 = vld [vmem:[%s6637_s12 + $0x3e4] ss:$16 sps:$4 sm:$0xff]   ;;  %v5599_v15 = vld [vmem:[%s6637_s12 + $0x3ec] ss:$16 sps:$4 sm:$0xff]  }
  0xda   : > { %3590 = vmatprep.subr.bf16.mxu0 %v5512_v16  ;;  %3918 = vmatprep.subr.bf16.mxu1 %v5515_v17  ;;  %v6805_v16 = vrot.slane %v873_v10, %v6705_v50  ;;  %v5594_v17 = vld [vmem:[%s6637_s12 + $0x3e0] ss:$16 sps:$4 sm:$0xff]   ;;  %v5675_v10 = vld [vmem:[%s6637_s12 + $0x588] ss:$16 sps:$4 sm:$0xff]  }
  0xdb   : > { %3620 = vmatprep.mubr.bf16.mxu0 %v920_v18  ;;  %3948 = vmatprep.mubr.bf16.mxu1 %v920_v18  ;;  %v5602_v18 = vld [vmem:[%s6637_s12 + $0x404] ss:$16 sps:$4 sm:$0xff]  }
  0xdd   : > { %3591 = vmatpush1.bf16.msra.mxu0 %v5510_v19  ;;  %3919 = vmatpush1.bf16.msra.mxu1 %v5513_v20  ;;  %v5605_v19 = vld [vmem:[%s6637_s12 + $0x40c] ss:$16 sps:$4 sm:$0xff]   ;;  %v889_v20 = vcombine.high %v6805_v16, %v6805_v16 }
  0xde   : > { %3592 = vmatprep.subr.bf16.mxu0 %v5518_v21  ;;  %3920 = vmatprep.subr.bf16.mxu1 %v5521_v22  ;;  %v5600_v21 = vld [vmem:[%s6637_s12 + $0x400] ss:$16 sps:$4 sm:$0xff]   ;;  %v918_v22 = vcombine.high %v6739_v14, %v6739_v14  ;;  %v5609_v14 = vld [vmem:[%s6637_s12 + $0x428] ss:$16 sps:$4 sm:$0xff]  }
  0xe1   : > { %3593 = vmatpush1.bf16.msra.mxu0 %v5516_v23  ;;  %3921 = vmatpush1.bf16.msra.mxu1 %v5519_v24  ;;  %v5603_v23 = vld [vmem:[%s6637_s12 + $0x408] ss:$16 sps:$4 sm:$0xff]   ;;  %v5608_v24 = vld [vmem:[%s6637_s12 + $0x424] ss:$16 sps:$4 sm:$0xff]  }
  0xe2   : > { %3594 = vmatprep.subr.bf16.mxu0 %v5524_v25  ;;  %3922 = vmatprep.subr.bf16.mxu1 %v5527_v26  ;;  %v5611_v25 = vld [vmem:[%s6637_s12 + $0x42c] ss:$16 sps:$4 sm:$0xff]   ;;  %v6820_v26 = vrot.slane %v889_v20, %v6705_v50  ;;  %v5692_v20 = vld [vmem:[%s6637_s12 + $0x5e4] ss:$16 sps:$4 sm:$0xff]  }
  0xe5   : > { %3595 = vmatpush1.bf16.msra.mxu0 %v5522_v27  ;;  %3923 = vmatpush1.bf16.msra.mxu1 %v5525_v28  ;;  %v5606_v27 = vld [vmem:[%s6637_s12 + $0x420] ss:$16 sps:$4 sm:$0xff]   ;;  %v5614_v28 = vld [vmem:[%s6637_s12 + $0x444] ss:$16 sps:$4 sm:$0xff]  }
  0xe6   : > { %3596 = vmatprep.subr.bf16.mxu0 %v5530_v29  ;;  %3924 = vmatprep.subr.bf16.mxu1 %v5533_v30  ;;  %v5617_v29 = vld [vmem:[%s6637_s12 + $0x44c] ss:$16 sps:$4 sm:$0xff]   ;;  %v5612_v30 = vld [vmem:[%s6637_s12 + $0x440] ss:$16 sps:$4 sm:$0xff]  }
  0xe9   : > { %3597 = vmatpush1.bf16.msra.mxu0 %v5528_v31  ;;  %3925 = vmatpush1.bf16.msra.mxu1 %v5531_v32  ;;  %v5615_v31 = vld [vmem:[%s6637_s12 + $0x448] ss:$16 sps:$4 sm:$0xff]   ;;  %v5620_v32 = vld [vmem:[%s6637_s12 + $0x464] ss:$16 sps:$4 sm:$0xff]  }
  0xea   : > { %3598 = vmatprep.subr.bf16.mxu0 %v5536_v33  ;;  %3926 = vmatprep.subr.bf16.mxu1 %v5539_v34  ;;  %v5623_v33 = vld [vmem:[%s6637_s12 + $0x46c] ss:$16 sps:$4 sm:$0xff]   ;;  %v5618_v34 = vld [vmem:[%s6637_s12 + $0x460] ss:$16 sps:$4 sm:$0xff]  }
  0xed   : > { %3599 = vmatpush1.bf16.msra.mxu0 %v5534_v35  ;;  %3927 = vmatpush1.bf16.msra.mxu1 %v5537_v36  ;;  %v5621_v35 = vld [vmem:[%s6637_s12 + $0x468] ss:$16 sps:$4 sm:$0xff]   ;;  %v5626_v36 = vld [vmem:[%s6637_s12 + $0x484] ss:$16 sps:$4 sm:$0xff]  }
  0xee   : > { %3600 = vmatprep.subr.bf16.mxu0 %v5542_v37  ;;  %3928 = vmatprep.subr.bf16.mxu1 %v5545_v38  ;;  %v5629_v37 = vld [vmem:[%s6637_s12 + $0x48c] ss:$16 sps:$4 sm:$0xff]   ;;  %v5624_v38 = vld [vmem:[%s6637_s12 + $0x480] ss:$16 sps:$4 sm:$0xff]  }
  0xf1   : > { %3601 = vmatpush1.bf16.msra.mxu0 %v5540_v39  ;;  %3929 = vmatpush1.bf16.msra.mxu1 %v5543_v40  ;;  %v5627_v39 = vld [vmem:[%s6637_s12 + $0x488] ss:$16 sps:$4 sm:$0xff]   ;;  %v5632_v40 = vld [vmem:[%s6637_s12 + $0x4a4] ss:$16 sps:$4 sm:$0xff]  }
  0xf2   : > { %3602 = vmatprep.subr.bf16.mxu0 %v5548_v41  ;;  %3930 = vmatprep.subr.bf16.mxu1 %v5551_v42  ;;  %v5635_v41 = vld [vmem:[%s6637_s12 + $0x4ac] ss:$16 sps:$4 sm:$0xff]   ;;  %v5630_v42 = vld [vmem:[%s6637_s12 + $0x4a0] ss:$16 sps:$4 sm:$0xff]  }
  0xf5   : > { %3603 = vmatpush1.bf16.msra.mxu0 %v5546_v44  ;;  %3931 = vmatpush1.bf16.msra.mxu1 %v5549_v45  ;;  %v5633_v44 = vld [vmem:[%s6637_s12 + $0x4a8] ss:$16 sps:$4 sm:$0xff]   ;;  %v5638_v45 = vld [vmem:[%s6637_s12 + $0x4c4] ss:$16 sps:$4 sm:$0xff]  }
  0xf6   : > { %3604 = vmatprep.subr.bf16.mxu0 %v5554_v46  ;;  %3932 = vmatprep.subr.bf16.mxu1 %v5557_v47  ;;  %v5641_v46 = vld [vmem:[%s6637_s12 + $0x4cc] ss:$16 sps:$4 sm:$0xff]   ;;  %v5636_v47 = vld [vmem:[%s6637_s12 + $0x4c0] ss:$16 sps:$4 sm:$0xff]  }
  0xf9   : > { %3605 = vmatpush1.bf16.msra.mxu0 %v5552_v48  ;;  %3933 = vmatpush1.bf16.msra.mxu1 %v5555_v49  ;;  %v5639_v48 = vld [vmem:[%s6637_s12 + $0x4c8] ss:$16 sps:$4 sm:$0xff]   ;;  %v5644_v49 = vld [vmem:[%s6637_s12 + $0x4e4] ss:$16 sps:$4 sm:$0xff]  }
  0xfa   : > { %3606 = vmatprep.subr.bf16.mxu0 %v5560_v51  ;;  %3934 = vmatprep.subr.bf16.mxu1 %v5563_v52  ;;  %v5647_v51 = vld [vmem:[%s6637_s12 + $0x4ec] ss:$16 sps:$4 sm:$0xff]   ;;  %v5642_v52 = vld [vmem:[%s6637_s12 + $0x4e0] ss:$16 sps:$4 sm:$0xff]  }
  0xfd   : > { %3607 = vmatpush1.bf16.msra.mxu0 %v5558_v54  ;;  %3935 = vmatpush1.bf16.msra.mxu1 %v5561_v55  ;;  %v5645_v54 = vld [vmem:[%s6637_s12 + $0x4e8] ss:$16 sps:$4 sm:$0xff]   ;;  %v5650_v55 = vld [vmem:[%s6637_s12 + $0x504] ss:$16 sps:$4 sm:$0xff]  }
  0xfe   : > { %3608 = vmatprep.subr.bf16.mxu0 %v5566_v56  ;;  %3936 = vmatprep.subr.bf16.mxu1 %v5569_v57  ;;  %v5653_v56 = vld [vmem:[%s6637_s12 + $0x50c] ss:$16 sps:$4 sm:$0xff]   ;;  %v5648_v57 = vld [vmem:[%s6637_s12 + $0x500] ss:$16 sps:$4 sm:$0xff]  }
 0x101   : > { %3609 = vmatpush1.bf16.msra.mxu0 %v5564_v58  ;;  %3937 = vmatpush1.bf16.msra.mxu1 %v5567_v59  ;;  %v5651_v58 = vld [vmem:[%s6637_s12 + $0x508] ss:$16 sps:$4 sm:$0xff]   ;;  %v5656_v59 = vld [vmem:[%s6637_s12 + $0x524] ss:$16 sps:$4 sm:$0xff]  }
 0x102   : > { %3610 = vmatprep.subr.bf16.mxu0 %v5572_v60  ;;  %3938 = vmatprep.subr.bf16.mxu1 %v5575_v61  ;;  %v5659_v60 = vld [vmem:[%s6637_s12 + $0x52c] ss:$16 sps:$4 sm:$0xff]   ;;  %v5654_v61 = vld [vmem:[%s6637_s12 + $0x520] ss:$16 sps:$4 sm:$0xff]  }
 0x105   : > { %3611 = vmatpush1.bf16.msra.mxu0 %v5570_v62  ;;  %3939 = vmatpush1.bf16.msra.mxu1 %v5573_v63  ;;  %v5657_v62 = vld [vmem:[%s6637_s12 + $0x528] ss:$16 sps:$4 sm:$0xff]   ;;  %v5662_v63 = vld [vmem:[%s6637_s12 + $0x544] ss:$16 sps:$4 sm:$0xff]  }
 0x106   : > { %3612 = vmatprep.subr.bf16.mxu0 %v5578_v0  ;;  %3940 = vmatprep.subr.bf16.mxu1 %v5581_v1  ;;  %v5665_v0 = vld [vmem:[%s6637_s12 + $0x54c] ss:$16 sps:$4 sm:$0xff]   ;;  %v5660_v1 = vld [vmem:[%s6637_s12 + $0x540] ss:$16 sps:$4 sm:$0xff]  }
 0x109   : > { %3613 = vmatpush1.bf16.msra.mxu0 %v5576_v2  ;;  %3941 = vmatpush1.bf16.msra.mxu1 %v5579_v3  ;;  %v5663_v2 = vld [vmem:[%s6637_s12 + $0x548] ss:$16 sps:$4 sm:$0xff]   ;;  %v5668_v3 = vld [vmem:[%s6637_s12 + $0x564] ss:$16 sps:$4 sm:$0xff]  }
 0x10a   : > { %3614 = vmatprep.subr.bf16.mxu0 %v5584_v4  ;;  %3942 = vmatprep.subr.bf16.mxu1 %v5587_v5  ;;  %v5671_v4 = vld [vmem:[%s6637_s12 + $0x56c] ss:$16 sps:$4 sm:$0xff]   ;;  %v5666_v5 = vld [vmem:[%s6637_s12 + $0x560] ss:$16 sps:$4 sm:$0xff]  }
 0x10d   : > { %3615 = vmatpush1.bf16.msra.mxu0 %v5582_v6  ;;  %3943 = vmatpush1.bf16.msra.mxu1 %v5585_v7  ;;  %v5669_v6 = vld [vmem:[%s6637_s12 + $0x568] ss:$16 sps:$4 sm:$0xff]   ;;  %v5674_v7 = vld [vmem:[%s6637_s12 + $0x584] ss:$16 sps:$4 sm:$0xff]  }
 0x10e   : > { %3616 = vmatprep.subr.bf16.mxu0 %v5590_v8  ;;  %3944 = vmatprep.subr.bf16.mxu1 %v5593_v9  ;;  %v5677_v8 = vld [vmem:[%s6637_s12 + $0x58c] ss:$16 sps:$4 sm:$0xff]   ;;  %v5672_v9 = vld [vmem:[%s6637_s12 + $0x580] ss:$16 sps:$4 sm:$0xff]  }
 0x111   : > { %3617 = vmatpush1.bf16.msra.mxu0 %v5588_v11  ;;  %3945 = vmatpush1.bf16.msra.mxu1 %v5591_v12  ;;  %v5680_v11 = vld [vmem:[%s6637_s12 + $0x5a4] ss:$16 sps:$4 sm:$0xff]   ;;  %v5683_v12 = vld [vmem:[%s6637_s12 + $0x5ac] ss:$16 sps:$4 sm:$0xff]  }
 0x112   : > { %3618 = vmatprep.subr.bf16.mxu0 %v5596_v13  ;;  %3946 = vmatprep.subr.bf16.mxu1 %v5599_v15  ;;  %v5678_v13 = vld [vmem:[%s6637_s12 + $0x5a0] ss:$16 sps:$4 sm:$0xff]   ;;  %v5681_v15 = vld [vmem:[%s6637_s12 + $0x5a8] ss:$16 sps:$4 sm:$0xff]  }
 0x115   : > { %3619 = vmatpush1.bf16.msra.mxu0 %v5594_v17  ;;  %3947 = vmatpush1.bf16.msra.mxu1 %v5597_v53  ;;  %v5686_v17 = vld [vmem:[%s6637_s12 + $0x5c4] ss:$16 sps:$4 sm:$0xff]   ;;  %v5689_v53 = vld [vmem:[%s6637_s12 + $0x5cc] ss:$16 sps:$4 sm:$0xff]  }
 0x116   : > { %3629 = vmatprep.subr.bf16.mxu0 %v5602_v18  ;;  %3957 = vmatprep.subr.bf16.mxu1 %v5605_v19  ;;  %v5684_v18 = vld [vmem:[%s6637_s12 + $0x5c0] ss:$16 sps:$4 sm:$0xff]   ;;  %v5687_v19 = vld [vmem:[%s6637_s12 + $0x5c8] ss:$16 sps:$4 sm:$0xff]  }
 0x118   : > { %3621 = vmatmul.mubr.bf16.vlgmr.msra.gmra.mrb[0].mxu0 %v918_v22  ;;  %3949 = vmatmul.mubr.bf16.vlgmr.msra.gmra.mrb[0].mxu1 %v918_v22  ;;  %v5690_v22 = vld [vmem:[%s6637_s12 + $0x5e0] ss:$16 sps:$4 sm:$0xff]  }
 0x119   : > { %3630 = vmatpush1.bf16.msra.mxu0 %v5600_v21  ;;  %3958 = vmatpush1.bf16.msra.mxu1 %v5603_v23  ;;  %v5695_v21 = vld [vmem:[%s6637_s12 + $0x5ec] ss:$16 sps:$4 sm:$0xff]   ;;  %v5693_v23 = vld [vmem:[%s6637_s12 + $0x5e8] ss:$16 sps:$4 sm:$0xff]  }
 0x11a   : > { %3631 = vmatprep.subr.bf16.mxu0 %v5608_v24  ;;  %3959 = vmatprep.subr.bf16.mxu1 %v5611_v25  ;;  %v5699_v24 = vld [vmem:[%s6637_s12 + $0x604] ss:$16 sps:$4 sm:$0xff]   ;;  %v5702_v25 = vld [vmem:[%s6637_s12 + $0x60c] ss:$16 sps:$4 sm:$0xff]  }
 0x11b   : > { %3661 = vmatprep.mubr.bf16.mxu0 %v6820_v26  ;;  %3989 = vmatprep.mubr.bf16.mxu1 %v6820_v26 }
 0x11d   : > { %3632 = vmatpush1.bf16.msra.mxu0 %v5606_v27  ;;  %3960 = vmatpush1.bf16.msra.mxu1 %v5609_v14  ;;  %v5697_v27 = vld [vmem:[%s6637_s12 + $0x600] ss:$16 sps:$4 sm:$0xff]   ;;  %v6887_v14 = vrot.slane %v6805_v16, %v6705_v50 }
 0x11e   : > { %3633 = vmatprep.subr.bf16.mxu0 %v5614_v28  ;;  %3961 = vmatprep.subr.bf16.mxu1 %v5617_v29  ;;  %v5700_v28 = vld [vmem:[%s6637_s12 + $0x608] ss:$16 sps:$4 sm:$0xff]   ;;  %v5705_v29 = vld [vmem:[%s6637_s12 + $0x624] ss:$16 sps:$4 sm:$0xff]   ;;  %v5703_v16 = vld [vmem:[%s6637_s12 + $0x620] ss:$16 sps:$4 sm:$0xff]  }
 0x121   : > { %3634 = vmatpush1.bf16.msra.mxu0 %v5612_v30  ;;  %3962 = vmatpush1.bf16.msra.mxu1 %v5615_v31  ;;  %v5708_v30 = vld [vmem:[%s6637_s12 + $0x62c] ss:$16 sps:$4 sm:$0xff]   ;;  %v921_v31 = vcombine.high %v6820_v26, %v6820_v26  ;;  %v5709_v26 = vld [vmem:[%s6637_s12 + $0x640] ss:$16 sps:$4 sm:$0xff]  }
 0x122   : > { %3635 = vmatprep.subr.bf16.mxu0 %v5620_v32  ;;  %3963 = vmatprep.subr.bf16.mxu1 %v5623_v33  ;;  %v5706_v32 = vld [vmem:[%s6637_s12 + $0x628] ss:$16 sps:$4 sm:$0xff]   ;;  %v5711_v33 = vld [vmem:[%s6637_s12 + $0x644] ss:$16 sps:$4 sm:$0xff]  }
 0x125   : > { %3636 = vmatpush1.bf16.msra.mxu0 %v5618_v34  ;;  %3964 = vmatpush1.bf16.msra.mxu1 %v5621_v35  ;;  %v5714_v34 = vld [vmem:[%s6637_s12 + $0x64c] ss:$16 sps:$4 sm:$0xff]   ;;  %v5712_v35 = vld [vmem:[%s6637_s12 + $0x648] ss:$16 sps:$4 sm:$0xff]  }
 0x126   : > { %3637 = vmatprep.subr.bf16.mxu0 %v5626_v36  ;;  %3965 = vmatprep.subr.bf16.mxu1 %v5629_v37  ;;  %v5717_v36 = vld [vmem:[%s6637_s12 + $0x664] ss:$16 sps:$4 sm:$0xff]   ;;  %v5720_v37 = vld [vmem:[%s6637_s12 + $0x66c] ss:$16 sps:$4 sm:$0xff]  }
 0x129   : > { %3638 = vmatpush1.bf16.msra.mxu0 %v5624_v38  ;;  %3966 = vmatpush1.bf16.msra.mxu1 %v5627_v39  ;;  %v5715_v38 = vld [vmem:[%s6637_s12 + $0x660] ss:$16 sps:$4 sm:$0xff]   ;;  %v5718_v39 = vld [vmem:[%s6637_s12 + $0x668] ss:$16 sps:$4 sm:$0xff]  }
 0x12a   : > { %3639 = vmatprep.subr.bf16.mxu0 %v5632_v40  ;;  %3967 = vmatprep.subr.bf16.mxu1 %v5635_v41  ;;  %v5723_v40 = vld [vmem:[%s6637_s12 + $0x684] ss:$16 sps:$4 sm:$0xff]   ;;  %v5726_v41 = vld [vmem:[%s6637_s12 + $0x68c] ss:$16 sps:$4 sm:$0xff]  }
 0x12d   : > { %3640 = vmatpush1.bf16.msra.mxu0 %v5630_v42  ;;  %3968 = vmatpush1.bf16.msra.mxu1 %v5633_v44  ;;  %v5721_v42 = vld [vmem:[%s6637_s12 + $0x680] ss:$16 sps:$4 sm:$0xff]   ;;  %v5724_v44 = vld [vmem:[%s6637_s12 + $0x688] ss:$16 sps:$4 sm:$0xff]  }
 0x12e   : > { %3641 = vmatprep.subr.bf16.mxu0 %v5638_v45  ;;  %3969 = vmatprep.subr.bf16.mxu1 %v5641_v46  ;;  %v5729_v45 = vld [vmem:[%s6637_s12 + $0x6a4] ss:$16 sps:$4 sm:$0xff]   ;;  %v5732_v46 = vld [vmem:[%s6637_s12 + $0x6ac] ss:$16 sps:$4 sm:$0xff]  }
 0x131   : > { %3642 = vmatpush1.bf16.msra.mxu0 %v5636_v47  ;;  %3970 = vmatpush1.bf16.msra.mxu1 %v5639_v48  ;;  %v5727_v47 = vld [vmem:[%s6637_s12 + $0x6a0] ss:$16 sps:$4 sm:$0xff]   ;;  %v5730_v48 = vld [vmem:[%s6637_s12 + $0x6a8] ss:$16 sps:$4 sm:$0xff]  }
 0x132   : > { %3643 = vmatprep.subr.bf16.mxu0 %v5644_v49  ;;  %3971 = vmatprep.subr.bf16.mxu1 %v5647_v51  ;;  %v5735_v49 = vld [vmem:[%s6637_s12 + $0x6c4] ss:$16 sps:$4 sm:$0xff]   ;;  %v5738_v51 = vld [vmem:[%s6637_s12 + $0x6cc] ss:$16 sps:$4 sm:$0xff]  }
 0x135   : > { %3644 = vmatpush1.bf16.msra.mxu0 %v5642_v52  ;;  %3972 = vmatpush1.bf16.msra.mxu1 %v5645_v54  ;;  %v5733_v52 = vld [vmem:[%s6637_s12 + $0x6c0] ss:$16 sps:$4 sm:$0xff]   ;;  %v5736_v54 = vld [vmem:[%s6637_s12 + $0x6c8] ss:$16 sps:$4 sm:$0xff]  }
 0x136   : > { %3645 = vmatprep.subr.bf16.mxu0 %v5650_v55  ;;  %3973 = vmatprep.subr.bf16.mxu1 %v5653_v56  ;;  %v5741_v55 = vld [vmem:[%s6637_s12 + $0x6e4] ss:$16 sps:$4 sm:$0xff]   ;;  %v5744_v56 = vld [vmem:[%s6637_s12 + $0x6ec] ss:$16 sps:$4 sm:$0xff]  }
 0x139   : > { %3646 = vmatpush1.bf16.msra.mxu0 %v5648_v57  ;;  %3974 = vmatpush1.bf16.msra.mxu1 %v5651_v58  ;;  %v5739_v57 = vld [vmem:[%s6637_s12 + $0x6e0] ss:$16 sps:$4 sm:$0xff]   ;;  %v5742_v58 = vld [vmem:[%s6637_s12 + $0x6e8] ss:$16 sps:$4 sm:$0xff]  }
 0x13a   : > { %3647 = vmatprep.subr.bf16.mxu0 %v5656_v59  ;;  %3975 = vmatprep.subr.bf16.mxu1 %v5659_v60  ;;  %v5747_v59 = vld [vmem:[%s6637_s12 + $0x704] ss:$16 sps:$4 sm:$0xff]   ;;  %v5750_v60 = vld [vmem:[%s6637_s12 + $0x70c] ss:$16 sps:$4 sm:$0xff]  }
 0x13d   : > { %3648 = vmatpush1.bf16.msra.mxu0 %v5654_v61  ;;  %3976 = vmatpush1.bf16.msra.mxu1 %v5657_v62  ;;  %v5745_v61 = vld [vmem:[%s6637_s12 + $0x700] ss:$16 sps:$4 sm:$0xff]   ;;  %v5748_v62 = vld [vmem:[%s6637_s12 + $0x708] ss:$16 sps:$4 sm:$0xff]  }
 0x13e   : > { %3649 = vmatprep.subr.bf16.mxu0 %v5662_v63  ;;  %3977 = vmatprep.subr.bf16.mxu1 %v5665_v0  ;;  %v5753_v63 = vld [vmem:[%s6637_s12 + $0x724] ss:$16 sps:$4 sm:$0xff]   ;;  %v5756_v0 = vld [vmem:[%s6637_s12 + $0x72c] ss:$16 sps:$4 sm:$0xff]  }
 0x141   : > { %3650 = vmatpush1.bf16.msra.mxu0 %v5660_v1  ;;  %3978 = vmatpush1.bf16.msra.mxu1 %v5663_v2  ;;  %v5751_v1 = vld [vmem:[%s6637_s12 + $0x720] ss:$16 sps:$4 sm:$0xff]   ;;  %v5754_v2 = vld [vmem:[%s6637_s12 + $0x728] ss:$16 sps:$4 sm:$0xff]  }
 0x142   : > { %3651 = vmatprep.subr.bf16.mxu0 %v5668_v3  ;;  %3979 = vmatprep.subr.bf16.mxu1 %v5671_v4  ;;  %v5759_v3 = vld [vmem:[%s6637_s12 + $0x744] ss:$16 sps:$4 sm:$0xff]   ;;  %v5762_v4 = vld [vmem:[%s6637_s12 + $0x74c] ss:$16 sps:$4 sm:$0xff]  }
 0x145   : > { %3652 = vmatpush1.bf16.msra.mxu0 %v5666_v5  ;;  %3980 = vmatpush1.bf16.msra.mxu1 %v5669_v6  ;;  %v5757_v5 = vld [vmem:[%s6637_s12 + $0x740] ss:$16 sps:$4 sm:$0xff]   ;;  %v5760_v6 = vld [vmem:[%s6637_s12 + $0x748] ss:$16 sps:$4 sm:$0xff]  }
 0x146   : > { %3653 = vmatprep.subr.bf16.mxu0 %v5674_v7  ;;  %3981 = vmatprep.subr.bf16.mxu1 %v5677_v8  ;;  %v5765_v7 = vld [vmem:[%s6637_s12 + $0x764] ss:$16 sps:$4 sm:$0xff]   ;;  %v5768_v8 = vld [vmem:[%s6637_s12 + $0x76c] ss:$16 sps:$4 sm:$0xff]  }
 0x149   : > { %3654 = vmatpush1.bf16.msra.mxu0 %v5672_v9  ;;  %3982 = vmatpush1.bf16.msra.mxu1 %v5675_v10  ;;  %v5763_v9 = vld [vmem:[%s6637_s12 + $0x760] ss:$16 sps:$4 sm:$0xff]   ;;  %v5766_v10 = vld [vmem:[%s6637_s12 + $0x768] ss:$16 sps:$4 sm:$0xff]  }
 0x14a   : > { %3655 = vmatprep.subr.bf16.mxu0 %v5680_v11  ;;  %3983 = vmatprep.subr.bf16.mxu1 %v5683_v12  ;;  %v5771_v11 = vld [vmem:[%s6637_s12 + $0x784] ss:$16 sps:$4 sm:$0xff]   ;;  %v5774_v12 = vld [vmem:[%s6637_s12 + $0x78c] ss:$16 sps:$4 sm:$0xff]  }
 0x14d   : > { %3656 = vmatpush1.bf16.msra.mxu0 %v5678_v13  ;;  %3984 = vmatpush1.bf16.msra.mxu1 %v5681_v15  ;;  %v5769_v13 = vld [vmem:[%s6637_s12 + $0x780] ss:$16 sps:$4 sm:$0xff]   ;;  %v5772_v15 = vld [vmem:[%s6637_s12 + $0x788] ss:$16 sps:$4 sm:$0xff]  }
 0x14e   : > { %3657 = vmatprep.subr.bf16.mxu0 %v5686_v17  ;;  %3985 = vmatprep.subr.bf16.mxu1 %v5689_v53  ;;  %v5777_v17 = vld [vmem:[%s6637_s12 + $0x7a4] ss:$16 sps:$4 sm:$0xff]   ;;  %v5780_v53 = vld [vmem:[%s6637_s12 + $0x7ac] ss:$16 sps:$4 sm:$0xff]  }
 0x151   : > { %3658 = vmatpush1.bf16.msra.mxu0 %v5684_v18  ;;  %3986 = vmatpush1.bf16.msra.mxu1 %v5687_v19  ;;  %v5775_v18 = vld [vmem:[%s6637_s12 + $0x7a0] ss:$16 sps:$4 sm:$0xff]   ;;  %v5778_v19 = vld [vmem:[%s6637_s12 + $0x7a8] ss:$16 sps:$4 sm:$0xff]  }
 0x152   : > { %3659 = vmatprep.subr.bf16.mxu0 %v5692_v20  ;;  %3987 = vmatprep.subr.bf16.mxu1 %v5695_v21  ;;  %v5783_v20 = vld [vmem:[%s6637_s12 + $0x7c4] ss:$16 sps:$4 sm:$0xff]   ;;  %v5786_v21 = vld [vmem:[%s6637_s12 + $0x7cc] ss:$16 sps:$4 sm:$0xff]  }
 0x155   : > { %3660 = vmatpush1.bf16.msra.mxu0 %v5690_v22  ;;  %3988 = vmatpush1.bf16.msra.mxu1 %v5693_v23  ;;  %v6951_v22 = vld [vmem:[%s7333_s0 + $0x8] sm:$0xff] }
 0x156   : > { %3670 = vmatprep.subr.bf16.mxu0 %v5699_v24  ;;  %3998 = vmatprep.subr.bf16.mxu1 %v5702_v25  ;;  %v5781_v23 = vld [vmem:[%s6637_s12 + $0x7c0] ss:$16 sps:$4 sm:$0xff]   ;;  %v5784_v24 = vld [vmem:[%s6637_s12 + $0x7c8] ss:$16 sps:$4 sm:$0xff]   ;;  %v5789_v25 = vld [vmem:[%s6637_s12 + $0x7e4] ss:$16 sps:$4 sm:$0xff]  }
 0x158   : > { %3662 = vmatmul.mubr.bf16.vlgmr.msra.gmra.mrb[0].mxu0 %v6887_v14  ;;  %3990 = vmatmul.mubr.bf16.vlgmr.msra.gmra.mrb[0].mxu1 %v6887_v14 }
 0x159   : > { %3671 = vmatpush1.bf16.msra.mxu0 %v5697_v27  ;;  %3999 = vmatpush1.bf16.msra.mxu1 %v5700_v28  ;;  %v5792_v27 = vld [vmem:[%s6637_s12 + $0x7ec] ss:$16 sps:$4 sm:$0xff]   ;;  %v6959_v28 = vrot.slane %v6951_v22, %v6705_v50 }
 0x15a   : > { %3672 = vmatprep.subr.bf16.mxu0 %v5705_v29  ;;  %4000 = vmatprep.subr.bf16.mxu1 %v5708_v30  ;;  %v5787_v29 = vld [vmem:[%s6637_s12 + $0x7e0] ss:$16 sps:$4 sm:$0xff]   ;;  %v5790_v30 = vld [vmem:[%s6637_s12 + $0x7e8] ss:$16 sps:$4 sm:$0xff]  }
 0x15b   : > { %3702 = vmatprep.mubr.bf16.mxu0 %v921_v31  ;;  %4030 = vmatprep.mubr.bf16.mxu1 %v921_v31  ;;  %v5795_v31 = vld [vmem:[%s6637_s12 + $0x804] ss:$16 sps:$4 sm:$0xff]  }
 0x15d   : > { %3673 = vmatpush1.bf16.msra.mxu0 %v5703_v16  ;;  %4001 = vmatpush1.bf16.msra.mxu1 %v5706_v32  ;;  %v5798_v16 = vld [vmem:[%s6637_s12 + $0x80c] ss:$16 sps:$4 sm:$0xff]   ;;  %v937_v32 = vcombine.high %v6959_v28, %v6959_v28 }
 0x15e   : > { %3674 = vmatprep.subr.bf16.mxu0 %v5711_v33  ;;  %4002 = vmatprep.subr.bf16.mxu1 %v5714_v34  ;;  %v919_v33 = vcombine.high %v6887_v14, %v6887_v14  ;;  %v5793_v34 = vld [vmem:[%s6637_s12 + $0x800] ss:$16 sps:$4 sm:$0xff]  }
 0x15f   : > { %v5799_v14 = vld [vmem:[%s6637_s12 + $0x820] ss:$16 sps:$4 sm:$0xff]  }
 0x161   : > { %3675 = vmatpush1.bf16.msra.mxu0 %v5709_v26  ;;  %4003 = vmatpush1.bf16.msra.mxu1 %v5712_v35  ;;  %v5796_v26 = vld [vmem:[%s6637_s12 + $0x808] ss:$16 sps:$4 sm:$0xff]   ;;  %v5801_v35 = vld [vmem:[%s6637_s12 + $0x824] ss:$16 sps:$4 sm:$0xff]  }
 0x162   : > { %3676 = vmatprep.subr.bf16.mxu0 %v5717_v36  ;;  %4004 = vmatprep.subr.bf16.mxu1 %v5720_v37  ;;  %v5804_v36 = vld [vmem:[%s6637_s12 + $0x82c] ss:$16 sps:$4 sm:$0xff]   ;;  %v6974_v37 = vrot.slane %v937_v32, %v6705_v50  ;;  %v5880_v32 = vld [vmem:[%s6637_s12 + $0x9c8] ss:$16 sps:$4 sm:$0xff]  }
 0x165   : > { %3677 = vmatpush1.bf16.msra.mxu0 %v5715_v38  ;;  %4005 = vmatpush1.bf16.msra.mxu1 %v5718_v39  ;;  %v5802_v38 = vld [vmem:[%s6637_s12 + $0x828] ss:$16 sps:$4 sm:$0xff]   ;;  %v5807_v39 = vld [vmem:[%s6637_s12 + $0x844] ss:$16 sps:$4 sm:$0xff]  }
 0x166   : > { %3678 = vmatprep.subr.bf16.mxu0 %v5723_v40  ;;  %4006 = vmatprep.subr.bf16.mxu1 %v5726_v41  ;;  %v5810_v40 = vld [vmem:[%s6637_s12 + $0x84c] ss:$16 sps:$4 sm:$0xff]   ;;  %v5805_v41 = vld [vmem:[%s6637_s12 + $0x840] ss:$16 sps:$4 sm:$0xff]  }
 0x169   : > { %3679 = vmatpush1.bf16.msra.mxu0 %v5721_v42  ;;  %4007 = vmatpush1.bf16.msra.mxu1 %v5724_v44  ;;  %v5808_v42 = vld [vmem:[%s6637_s12 + $0x848] ss:$16 sps:$4 sm:$0xff]   ;;  %v5813_v44 = vld [vmem:[%s6637_s12 + $0x864] ss:$16 sps:$4 sm:$0xff]  }
 0x16a   : > { %3680 = vmatprep.subr.bf16.mxu0 %v5729_v45  ;;  %4008 = vmatprep.subr.bf16.mxu1 %v5732_v46  ;;  %v5816_v45 = vld [vmem:[%s6637_s12 + $0x86c] ss:$16 sps:$4 sm:$0xff]   ;;  %v5811_v46 = vld [vmem:[%s6637_s12 + $0x860] ss:$16 sps:$4 sm:$0xff]  }
 0x16d   : > { %3681 = vmatpush1.bf16.msra.mxu0 %v5727_v47  ;;  %4009 = vmatpush1.bf16.msra.mxu1 %v5730_v48  ;;  %v5814_v47 = vld [vmem:[%s6637_s12 + $0x868] ss:$16 sps:$4 sm:$0xff]   ;;  %v5819_v48 = vld [vmem:[%s6637_s12 + $0x884] ss:$16 sps:$4 sm:$0xff]  }
 0x16e   : > { %3682 = vmatprep.subr.bf16.mxu0 %v5735_v49  ;;  %4010 = vmatprep.subr.bf16.mxu1 %v5738_v51  ;;  %v5822_v49 = vld [vmem:[%s6637_s12 + $0x88c] ss:$16 sps:$4 sm:$0xff]   ;;  %v5817_v51 = vld [vmem:[%s6637_s12 + $0x880] ss:$16 sps:$4 sm:$0xff]  }
 0x171   : > { %3683 = vmatpush1.bf16.msra.mxu0 %v5733_v52  ;;  %4011 = vmatpush1.bf16.msra.mxu1 %v5736_v54  ;;  %v5820_v52 = vld [vmem:[%s6637_s12 + $0x888] ss:$16 sps:$4 sm:$0xff]   ;;  %v5825_v54 = vld [vmem:[%s6637_s12 + $0x8a4] ss:$16 sps:$4 sm:$0xff]  }
 0x172   : > { %3684 = vmatprep.subr.bf16.mxu0 %v5741_v55  ;;  %4012 = vmatprep.subr.bf16.mxu1 %v5744_v56  ;;  %v5828_v55 = vld [vmem:[%s6637_s12 + $0x8ac] ss:$16 sps:$4 sm:$0xff]   ;;  %v5823_v56 = vld [vmem:[%s6637_s12 + $0x8a0] ss:$16 sps:$4 sm:$0xff]  }
 0x175   : > { %3685 = vmatpush1.bf16.msra.mxu0 %v5739_v57  ;;  %4013 = vmatpush1.bf16.msra.mxu1 %v5742_v58  ;;  %v5826_v57 = vld [vmem:[%s6637_s12 + $0x8a8] ss:$16 sps:$4 sm:$0xff]   ;;  %v5831_v58 = vld [vmem:[%s6637_s12 + $0x8c4] ss:$16 sps:$4 sm:$0xff]  }
 0x176   : > { %3686 = vmatprep.subr.bf16.mxu0 %v5747_v59  ;;  %4014 = vmatprep.subr.bf16.mxu1 %v5750_v60  ;;  %v5834_v59 = vld [vmem:[%s6637_s12 + $0x8cc] ss:$16 sps:$4 sm:$0xff]   ;;  %v5829_v60 = vld [vmem:[%s6637_s12 + $0x8c0] ss:$16 sps:$4 sm:$0xff]  }
 0x179   : > { %3687 = vmatpush1.bf16.msra.mxu0 %v5745_v61  ;;  %4015 = vmatpush1.bf16.msra.mxu1 %v5748_v62  ;;  %v5832_v61 = vld [vmem:[%s6637_s12 + $0x8c8] ss:$16 sps:$4 sm:$0xff]   ;;  %v5837_v62 = vld [vmem:[%s6637_s12 + $0x8e4] ss:$16 sps:$4 sm:$0xff]  }
 0x17a   : > { %3688 = vmatprep.subr.bf16.mxu0 %v5753_v63  ;;  %4016 = vmatprep.subr.bf16.mxu1 %v5756_v0  ;;  %v5840_v63 = vld [vmem:[%s6637_s12 + $0x8ec] ss:$16 sps:$4 sm:$0xff]   ;;  %v5835_v0 = vld [vmem:[%s6637_s12 + $0x8e0] ss:$16 sps:$4 sm:$0xff]  }
 0x17d   : > { %3689 = vmatpush1.bf16.msra.mxu0 %v5751_v1  ;;  %4017 = vmatpush1.bf16.msra.mxu1 %v5754_v2  ;;  %v5838_v1 = vld [vmem:[%s6637_s12 + $0x8e8] ss:$16 sps:$4 sm:$0xff]   ;;  %v5843_v2 = vld [vmem:[%s6637_s12 + $0x904] ss:$16 sps:$4 sm:$0xff]  }
 0x17e   : > { %3690 = vmatprep.subr.bf16.mxu0 %v5759_v3  ;;  %4018 = vmatprep.subr.bf16.mxu1 %v5762_v4  ;;  %v5846_v3 = vld [vmem:[%s6637_s12 + $0x90c] ss:$16 sps:$4 sm:$0xff]   ;;  %v5841_v4 = vld [vmem:[%s6637_s12 + $0x900] ss:$16 sps:$4 sm:$0xff]  }
 0x181   : > { %3691 = vmatpush1.bf16.msra.mxu0 %v5757_v5  ;;  %4019 = vmatpush1.bf16.msra.mxu1 %v5760_v6  ;;  %v5844_v5 = vld [vmem:[%s6637_s12 + $0x908] ss:$16 sps:$4 sm:$0xff]   ;;  %v5849_v6 = vld [vmem:[%s6637_s12 + $0x924] ss:$16 sps:$4 sm:$0xff]  }
 0x182   : > { %3692 = vmatprep.subr.bf16.mxu0 %v5765_v7  ;;  %4020 = vmatprep.subr.bf16.mxu1 %v5768_v8  ;;  %v5852_v7 = vld [vmem:[%s6637_s12 + $0x92c] ss:$16 sps:$4 sm:$0xff]   ;;  %v5847_v8 = vld [vmem:[%s6637_s12 + $0x920] ss:$16 sps:$4 sm:$0xff]  }
 0x185   : > { %3693 = vmatpush1.bf16.msra.mxu0 %v5763_v9  ;;  %4021 = vmatpush1.bf16.msra.mxu1 %v5766_v10  ;;  %v5850_v9 = vld [vmem:[%s6637_s12 + $0x928] ss:$16 sps:$4 sm:$0xff]   ;;  %v5855_v10 = vld [vmem:[%s6637_s12 + $0x944] ss:$16 sps:$4 sm:$0xff]  }
 0x186   : > { %3694 = vmatprep.subr.bf16.mxu0 %v5771_v11  ;;  %4022 = vmatprep.subr.bf16.mxu1 %v5774_v12  ;;  %v5858_v11 = vld [vmem:[%s6637_s12 + $0x94c] ss:$16 sps:$4 sm:$0xff]   ;;  %v5853_v12 = vld [vmem:[%s6637_s12 + $0x940] ss:$16 sps:$4 sm:$0xff]  }
 0x189   : > { %3695 = vmatpush1.bf16.msra.mxu0 %v5769_v13  ;;  %4023 = vmatpush1.bf16.msra.mxu1 %v5772_v15  ;;  %v5856_v13 = vld [vmem:[%s6637_s12 + $0x948] ss:$16 sps:$4 sm:$0xff]   ;;  %v5861_v15 = vld [vmem:[%s6637_s12 + $0x964] ss:$16 sps:$4 sm:$0xff]  }
 0x18a   : > { %3696 = vmatprep.subr.bf16.mxu0 %v5777_v17  ;;  %4024 = vmatprep.subr.bf16.mxu1 %v5780_v53  ;;  %v5864_v17 = vld [vmem:[%s6637_s12 + $0x96c] ss:$16 sps:$4 sm:$0xff]   ;;  %v5859_v53 = vld [vmem:[%s6637_s12 + $0x960] ss:$16 sps:$4 sm:$0xff]  }
 0x18d   : > { %3697 = vmatpush1.bf16.msra.mxu0 %v5775_v18  ;;  %4025 = vmatpush1.bf16.msra.mxu1 %v5778_v19  ;;  %v5862_v18 = vld [vmem:[%s6637_s12 + $0x968] ss:$16 sps:$4 sm:$0xff]   ;;  %v5867_v19 = vld [vmem:[%s6637_s12 + $0x984] ss:$16 sps:$4 sm:$0xff]  }
 0x18e   : > { %3698 = vmatprep.subr.bf16.mxu0 %v5783_v20  ;;  %4026 = vmatprep.subr.bf16.mxu1 %v5786_v21  ;;  %v5870_v20 = vld [vmem:[%s6637_s12 + $0x98c] ss:$16 sps:$4 sm:$0xff]   ;;  %v5865_v21 = vld [vmem:[%s6637_s12 + $0x980] ss:$16 sps:$4 sm:$0xff]  }
 0x191   : > { %3699 = vmatpush1.bf16.msra.mxu0 %v5781_v23  ;;  %4027 = vmatpush1.bf16.msra.mxu1 %v5784_v24  ;;  %v5868_v23 = vld [vmem:[%s6637_s12 + $0x988] ss:$16 sps:$4 sm:$0xff]   ;;  %v5873_v24 = vld [vmem:[%s6637_s12 + $0x9a4] ss:$16 sps:$4 sm:$0xff]  }
 0x192   : > { %3700 = vmatprep.subr.bf16.mxu0 %v5789_v25  ;;  %4028 = vmatprep.subr.bf16.mxu1 %v5792_v27  ;;  %v5876_v25 = vld [vmem:[%s6637_s12 + $0x9ac] ss:$16 sps:$4 sm:$0xff]   ;;  %v5871_v27 = vld [vmem:[%s6637_s12 + $0x9a0] ss:$16 sps:$4 sm:$0xff]  }
 0x195   : > { %3701 = vmatpush1.bf16.msra.mxu0 %v5787_v29  ;;  %4029 = vmatpush1.bf16.msra.mxu1 %v5790_v30  ;;  %v5874_v29 = vld [vmem:[%s6637_s12 + $0x9a8] ss:$16 sps:$4 sm:$0xff]   ;;  %v5879_v30 = vld [vmem:[%s6637_s12 + $0x9c4] ss:$16 sps:$4 sm:$0xff]  }
 0x196   : > { %3711 = vmatprep.subr.bf16.mxu0 %v5795_v31  ;;  %4039 = vmatprep.subr.bf16.mxu1 %v5798_v16  ;;  %v5882_v31 = vld [vmem:[%s6637_s12 + $0x9cc] ss:$16 sps:$4 sm:$0xff]   ;;  %v5877_v16 = vld [vmem:[%s6637_s12 + $0x9c0] ss:$16 sps:$4 sm:$0xff]  }
 0x198   : > { %3703 = vmatmul.mubr.bf16.vlgmr.msra.gmra.mrb[0].mxu0 %v919_v33  ;;  %4031 = vmatmul.mubr.bf16.vlgmr.msra.gmra.mrb[0].mxu1 %v919_v33  ;;  %v5885_v33 = vld [vmem:[%s6637_s12 + $0x9e4] ss:$16 sps:$4 sm:$0xff]  }
 0x199   : > { %3712 = vmatpush1.bf16.msra.mxu0 %v5793_v34  ;;  %4040 = vmatpush1.bf16.msra.mxu1 %v5796_v26  ;;  %v5888_v34 = vld [vmem:[%s6637_s12 + $0x9ec] ss:$16 sps:$4 sm:$0xff]   ;;  %v5883_v26 = vld [vmem:[%s6637_s12 + $0x9e0] ss:$16 sps:$4 sm:$0xff]  }
 0x19a   : > { %3713 = vmatprep.subr.bf16.mxu0 %v5801_v35  ;;  %4041 = vmatprep.subr.bf16.mxu1 %v5804_v36  ;;  %v5886_v35 = vld [vmem:[%s6637_s12 + $0x9e8] ss:$16 sps:$4 sm:$0xff]   ;;  %v5891_v36 = vld [vmem:[%s6637_s12 + $0xa04] ss:$16 sps:$4 sm:$0xff]  }
 0x19b   : > { %3743 = vmatprep.mubr.bf16.mxu0 %v6974_v37  ;;  %4071 = vmatprep.mubr.bf16.mxu1 %v6974_v37 }
 0x19d   : > { %3714 = vmatpush1.bf16.msra.mxu0 %v5799_v14  ;;  %4042 = vmatpush1.bf16.msra.mxu1 %v5802_v38  ;;  %v5894_v14 = vld [vmem:[%s6637_s12 + $0xa0c] ss:$16 sps:$4 sm:$0xff]   ;;  %v7040_v38 = vrot.slane %v6959_v28, %v6705_v50  ;;  %v5895_v28 = vld [vmem:[%s6637_s12 + $0xa20] ss:$16 sps:$4 sm:$0xff]  }
 0x19e   : > { %3715 = vmatprep.subr.bf16.mxu0 %v5807_v39  ;;  %4043 = vmatprep.subr.bf16.mxu1 %v5810_v40  ;;  %v5889_v39 = vld [vmem:[%s6637_s12 + $0xa00] ss:$16 sps:$4 sm:$0xff]   ;;  %v5892_v40 = vld [vmem:[%s6637_s12 + $0xa08] ss:$16 sps:$4 sm:$0xff]  }
 0x1a1   : > { %3716 = vmatpush1.bf16.msra.mxu0 %v5805_v41  ;;  %4044 = vmatpush1.bf16.msra.mxu1 %v5808_v42  ;;  %v5897_v41 = vld [vmem:[%s6637_s12 + $0xa24] ss:$16 sps:$4 sm:$0xff]   ;;  %v5900_v42 = vld [vmem:[%s6637_s12 + $0xa2c] ss:$16 sps:$4 sm:$0xff]  }
 0x1a2   : > { %3717 = vmatprep.subr.bf16.mxu0 %v5813_v44  ;;  %4045 = vmatprep.subr.bf16.mxu1 %v5816_v45  ;;  %v969_v44 = vcombine.high %v6974_v37, %v6974_v37  ;;  %v5898_v45 = vld [vmem:[%s6637_s12 + $0xa28] ss:$16 sps:$4 sm:$0xff]   ;;  %v5901_v37 = vld [vmem:[%s6637_s12 + $0xa40] ss:$16 sps:$4 sm:$0xff]  }
 0x1a5   : > { %3718 = vmatpush1.bf16.msra.mxu0 %v5811_v46  ;;  %4046 = vmatpush1.bf16.msra.mxu1 %v5814_v47  ;;  %v5903_v46 = vld [vmem:[%s6637_s12 + $0xa44] ss:$16 sps:$4 sm:$0xff]   ;;  %v5906_v47 = vld [vmem:[%s6637_s12 + $0xa4c] ss:$16 sps:$4 sm:$0xff]  }
 0x1a6   : > { %3719 = vmatprep.subr.bf16.mxu0 %v5819_v48  ;;  %4047 = vmatprep.subr.bf16.mxu1 %v5822_v49  ;;  %v5904_v48 = vld [vmem:[%s6637_s12 + $0xa48] ss:$16 sps:$4 sm:$0xff]   ;;  %v5909_v49 = vld [vmem:[%s6637_s12 + $0xa64] ss:$16 sps:$4 sm:$0xff]  }
 0x1a9   : > { %3720 = vmatpush1.bf16.msra.mxu0 %v5817_v51  ;;  %4048 = vmatpush1.bf16.msra.mxu1 %v5820_v52  ;;  %v5912_v51 = vld [vmem:[%s6637_s12 + $0xa6c] ss:$16 sps:$4 sm:$0xff]   ;;  %v5907_v52 = vld [vmem:[%s6637_s12 + $0xa60] ss:$16 sps:$4 sm:$0xff]  }
 0x1aa   : > { %3721 = vmatprep.subr.bf16.mxu0 %v5825_v54  ;;  %4049 = vmatprep.subr.bf16.mxu1 %v5828_v55  ;;  %v5910_v54 = vld [vmem:[%s6637_s12 + $0xa68] ss:$16 sps:$4 sm:$0xff]   ;;  %v5915_v55 = vld [vmem:[%s6637_s12 + $0xa84] ss:$16 sps:$4 sm:$0xff]  }
 0x1ad   : > { %3722 = vmatpush1.bf16.msra.mxu0 %v5823_v56  ;;  %4050 = vmatpush1.bf16.msra.mxu1 %v5826_v57  ;;  %v5918_v56 = vld [vmem:[%s6637_s12 + $0xa8c] ss:$16 sps:$4 sm:$0xff]   ;;  %v5913_v57 = vld [vmem:[%s6637_s12 + $0xa80] ss:$16 sps:$4 sm:$0xff]  }
 0x1ae   : > { %3723 = vmatprep.subr.bf16.mxu0 %v5831_v58  ;;  %4051 = vmatprep.subr.bf16.mxu1 %v5834_v59  ;;  %v5916_v58 = vld [vmem:[%s6637_s12 + $0xa88] ss:$16 sps:$4 sm:$0xff]   ;;  %v5921_v59 = vld [vmem:[%s6637_s12 + $0xaa4] ss:$16 sps:$4 sm:$0xff]  }
 0x1b1   : > { %3724 = vmatpush1.bf16.msra.mxu0 %v5829_v60  ;;  %4052 = vmatpush1.bf16.msra.mxu1 %v5832_v61  ;;  %v5924_v60 = vld [vmem:[%s6637_s12 + $0xaac] ss:$16 sps:$4 sm:$0xff]   ;;  %v5919_v61 = vld [vmem:[%s6637_s12 + $0xaa0] ss:$16 sps:$4 sm:$0xff]  }
 0x1b2   : > { %3725 = vmatprep.subr.bf16.mxu0 %v5837_v62  ;;  %4053 = vmatprep.subr.bf16.mxu1 %v5840_v63  ;;  %v5922_v62 = vld [vmem:[%s6637_s12 + $0xaa8] ss:$16 sps:$4 sm:$0xff]   ;;  %v5927_v63 = vld [vmem:[%s6637_s12 + $0xac4] ss:$16 sps:$4 sm:$0xff]  }
 0x1b5   : > { %3726 = vmatpush1.bf16.msra.mxu0 %v5835_v0  ;;  %4054 = vmatpush1.bf16.msra.mxu1 %v5838_v1  ;;  %v5930_v0 = vld [vmem:[%s6637_s12 + $0xacc] ss:$16 sps:$4 sm:$0xff]   ;;  %v5925_v1 = vld [vmem:[%s6637_s12 + $0xac0] ss:$16 sps:$4 sm:$0xff]  }
 0x1b6   : > { %3727 = vmatprep.subr.bf16.mxu0 %v5843_v2  ;;  %4055 = vmatprep.subr.bf16.mxu1 %v5846_v3  ;;  %v5928_v2 = vld [vmem:[%s6637_s12 + $0xac8] ss:$16 sps:$4 sm:$0xff]   ;;  %v5933_v3 = vld [vmem:[%s6637_s12 + $0xae4] ss:$16 sps:$4 sm:$0xff]  }
 0x1b9   : > { %3728 = vmatpush1.bf16.msra.mxu0 %v5841_v4  ;;  %4056 = vmatpush1.bf16.msra.mxu1 %v5844_v5  ;;  %v5936_v4 = vld [vmem:[%s6637_s12 + $0xaec] ss:$16 sps:$4 sm:$0xff]   ;;  %v5931_v5 = vld [vmem:[%s6637_s12 + $0xae0] ss:$16 sps:$4 sm:$0xff]  }
 0x1ba   : > { %3729 = vmatprep.subr.bf16.mxu0 %v5849_v6  ;;  %4057 = vmatprep.subr.bf16.mxu1 %v5852_v7  ;;  %v5934_v6 = vld [vmem:[%s6637_s12 + $0xae8] ss:$16 sps:$4 sm:$0xff]   ;;  %v5939_v7 = vld [vmem:[%s6637_s12 + $0xb04] ss:$16 sps:$4 sm:$0xff]  }
 0x1bd   : > { %3730 = vmatpush1.bf16.msra.mxu0 %v5847_v8  ;;  %4058 = vmatpush1.bf16.msra.mxu1 %v5850_v9  ;;  %v5942_v8 = vld [vmem:[%s6637_s12 + $0xb0c] ss:$16 sps:$4 sm:$0xff]   ;;  %v5937_v9 = vld [vmem:[%s6637_s12 + $0xb00] ss:$16 sps:$4 sm:$0xff]  }
 0x1be   : > { %3731 = vmatprep.subr.bf16.mxu0 %v5855_v10  ;;  %4059 = vmatprep.subr.bf16.mxu1 %v5858_v11  ;;  %v5940_v10 = vld [vmem:[%s6637_s12 + $0xb08] ss:$16 sps:$4 sm:$0xff]   ;;  %v5945_v11 = vld [vmem:[%s6637_s12 + $0xb24] ss:$16 sps:$4 sm:$0xff]  }
 0x1c1   : > { %3732 = vmatpush1.bf16.msra.mxu0 %v5853_v12  ;;  %4060 = vmatpush1.bf16.msra.mxu1 %v5856_v13  ;;  %v5948_v12 = vld [vmem:[%s6637_s12 + $0xb2c] ss:$16 sps:$4 sm:$0xff]   ;;  %v5943_v13 = vld [vmem:[%s6637_s12 + $0xb20] ss:$16 sps:$4 sm:$0xff]  }
 0x1c2   : > { %3733 = vmatprep.subr.bf16.mxu0 %v5861_v15  ;;  %4061 = vmatprep.subr.bf16.mxu1 %v5864_v17  ;;  %v5946_v15 = vld [vmem:[%s6637_s12 + $0xb28] ss:$16 sps:$4 sm:$0xff]   ;;  %v5951_v17 = vld [vmem:[%s6637_s12 + $0xb44] ss:$16 sps:$4 sm:$0xff]  }
 0x1c5   : > { %3734 = vmatpush1.bf16.msra.mxu0 %v5859_v53  ;;  %4062 = vmatpush1.bf16.msra.mxu1 %v5862_v18  ;;  %v5954_v53 = vld [vmem:[%s6637_s12 + $0xb4c] ss:$16 sps:$4 sm:$0xff]   ;;  %v5949_v18 = vld [vmem:[%s6637_s12 + $0xb40] ss:$16 sps:$4 sm:$0xff]  }
 0x1c6   : > { %3735 = vmatprep.subr.bf16.mxu0 %v5867_v19  ;;  %4063 = vmatprep.subr.bf16.mxu1 %v5870_v20  ;;  %v5952_v19 = vld [vmem:[%s6637_s12 + $0xb48] ss:$16 sps:$4 sm:$0xff]   ;;  %v5957_v20 = vld [vmem:[%s6637_s12 + $0xb64] ss:$16 sps:$4 sm:$0xff]  }
 0x1c9   : > { %3736 = vmatpush1.bf16.msra.mxu0 %v5865_v21  ;;  %4064 = vmatpush1.bf16.msra.mxu1 %v5868_v23  ;;  %v5960_v21 = vld [vmem:[%s6637_s12 + $0xb6c] ss:$16 sps:$4 sm:$0xff]   ;;  %v5955_v23 = vld [vmem:[%s6637_s12 + $0xb60] ss:$16 sps:$4 sm:$0xff]  }
 0x1ca   : > { %3737 = vmatprep.subr.bf16.mxu0 %v5873_v24  ;;  %4065 = vmatprep.subr.bf16.mxu1 %v5876_v25  ;;  %v5958_v24 = vld [vmem:[%s6637_s12 + $0xb68] ss:$16 sps:$4 sm:$0xff]   ;;  %v5963_v25 = vld [vmem:[%s6637_s12 + $0xb84] ss:$16 sps:$4 sm:$0xff]  }
 0x1cd   : > { %3738 = vmatpush1.bf16.msra.mxu0 %v5871_v27  ;;  %4066 = vmatpush1.bf16.msra.mxu1 %v5874_v29  ;;  %v5966_v27 = vld [vmem:[%s6637_s12 + $0xb8c] ss:$16 sps:$4 sm:$0xff]   ;;  %v5961_v29 = vld [vmem:[%s6637_s12 + $0xb80] ss:$16 sps:$4 sm:$0xff]  }
 0x1ce   : > { %3739 = vmatprep.subr.bf16.mxu0 %v5879_v30  ;;  %4067 = vmatprep.subr.bf16.mxu1 %v5882_v31  ;;  %v5964_v30 = vld [vmem:[%s6637_s12 + $0xb88] ss:$16 sps:$4 sm:$0xff]   ;;  %v5969_v31 = vld [vmem:[%s6637_s12 + $0xba4] ss:$16 sps:$4 sm:$0xff]  }
 0x1d1   : > { %3740 = vmatpush1.bf16.msra.mxu0 %v5877_v16  ;;  %4068 = vmatpush1.bf16.msra.mxu1 %v5880_v32  ;;  %v5972_v16 = vld [vmem:[%s6637_s12 + $0xbac] ss:$16 sps:$4 sm:$0xff]   ;;  %v5967_v32 = vld [vmem:[%s6637_s12 + $0xba0] ss:$16 sps:$4 sm:$0xff]  }
 0x1d2   : > { %3741 = vmatprep.subr.bf16.mxu0 %v5885_v33  ;;  %4069 = vmatprep.subr.bf16.mxu1 %v5888_v34  ;;  %v5970_v33 = vld [vmem:[%s6637_s12 + $0xba8] ss:$16 sps:$4 sm:$0xff]   ;;  %v5975_v34 = vld [vmem:[%s6637_s12 + $0xbc4] ss:$16 sps:$4 sm:$0xff]  }
 0x1d5   : > { %3742 = vmatpush1.bf16.msra.mxu0 %v5883_v26  ;;  %4070 = vmatpush1.bf16.msra.mxu1 %v5886_v35  ;;  %v5978_v26 = vld [vmem:[%s6637_s12 + $0xbcc] ss:$16 sps:$4 sm:$0xff]   ;;  %v922_v35 = vcombine.high %v6951_v22, %v6951_v22  ;;  %v5979_v22 = vld [vmem:[%s6637_s12 + $0xbe0] ss:$16 sps:$4 sm:$0xff]  }
 0x1d6   : > { %3752 = vmatprep.subr.bf16.mxu0 %v5891_v36  ;;  %4080 = vmatprep.subr.bf16.mxu1 %v5894_v14  ;;  %v5973_v36 = vld [vmem:[%s6637_s12 + $0xbc0] ss:$16 sps:$4 sm:$0xff]   ;;  %v5976_v14 = vld [vmem:[%s6637_s12 + $0xbc8] ss:$16 sps:$4 sm:$0xff]  }
 0x1d8   : > { %3744 = vmatmul.mubr.bf16.vlgmr.msra.gmra.mrb[0].mxu0 %v7040_v38  ;;  %4072 = vmatmul.mubr.bf16.vlgmr.msra.gmra.mrb[0].mxu1 %v7040_v38 }
 0x1d9   : > { %3753 = vmatpush1.bf16.msra.mxu0 %v5889_v39  ;;  %4081 = vmatpush1.bf16.msra.mxu1 %v5892_v40  ;;  %v5981_v39 = vld [vmem:[%s6637_s12 + $0xbe4] ss:$16 sps:$4 sm:$0xff]   ;;  %v5984_v40 = vld [vmem:[%s6637_s12 + $0xbec] ss:$16 sps:$4 sm:$0xff]  }
 0x1da   : > { %3754 = vmatprep.subr.bf16.mxu0 %v5897_v41  ;;  %4082 = vmatprep.subr.bf16.mxu1 %v5900_v42  ;;  %v7109_v41 = vrot.slane %v922_v35, %v6705_v50  ;;  %v5982_v42 = vld [vmem:[%s6637_s12 + $0xbe8] ss:$16 sps:$4 sm:$0xff]  }
 0x1db   : > { %3784 = vmatprep.mubr.bf16.mxu0 %v969_v44  ;;  %4112 = vmatprep.mubr.bf16.mxu1 %v969_v44  ;;  %v5987_v44 = vld [vmem:[%s6637_s12 + $0xc04] ss:$16 sps:$4 sm:$0xff]   ;;  %v6060_v35 = vld [vmem:[%s6637_s12 + $0xd88] ss:$16 sps:$4 sm:$0xff]  }
 0x1dd   : > { %3755 = vmatpush1.bf16.msra.mxu0 %v5895_v28  ;;  %4083 = vmatpush1.bf16.msra.mxu1 %v5898_v45  ;;  %v5990_v28 = vld [vmem:[%s6637_s12 + $0xc0c] ss:$16 sps:$4 sm:$0xff]   ;;  %v938_v45 = vcombine.high %v7109_v41, %v7109_v41 }
 0x1de   : > { %3756 = vmatprep.subr.bf16.mxu0 %v5903_v46  ;;  %4084 = vmatprep.subr.bf16.mxu1 %v5906_v47  ;;  %v967_v46 = vcombine.high %v7040_v38, %v7040_v38  ;;  %v5985_v47 = vld [vmem:[%s6637_s12 + $0xc00] ss:$16 sps:$4 sm:$0xff]  }
 0x1df   : > { %v5991_v38 = vld [vmem:[%s6637_s12 + $0xc20] ss:$16 sps:$4 sm:$0xff]  }
 0x1e1   : > { %3757 = vmatpush1.bf16.msra.mxu0 %v5901_v37  ;;  %4085 = vmatpush1.bf16.msra.mxu1 %v5904_v48  ;;  %v5988_v37 = vld [vmem:[%s6637_s12 + $0xc08] ss:$16 sps:$4 sm:$0xff]   ;;  %v5993_v48 = vld [vmem:[%s6637_s12 + $0xc24] ss:$16 sps:$4 sm:$0xff]  }
 0x1e2   : > { %3758 = vmatprep.subr.bf16.mxu0 %v5909_v49  ;;  %4086 = vmatprep.subr.bf16.mxu1 %v5912_v51  ;;  %v5996_v49 = vld [vmem:[%s6637_s12 + $0xc2c] ss:$16 sps:$4 sm:$0xff]   ;;  %v7124_v51 = vrot.slane %v938_v45, %v6705_v50  ;;  %v6077_v45 = vld [vmem:[%s6637_s12 + $0xde4] ss:$16 sps:$4 sm:$0xff]  }
 0x1e5   : > { %3759 = vmatpush1.bf16.msra.mxu0 %v5907_v52  ;;  %4087 = vmatpush1.bf16.msra.mxu1 %v5910_v54  ;;  %v5994_v52 = vld [vmem:[%s6637_s12 + $0xc28] ss:$16 sps:$4 sm:$0xff]   ;;  %v5999_v54 = vld [vmem:[%s6637_s12 + $0xc44] ss:$16 sps:$4 sm:$0xff]  }
 0x1e6   : > { %3760 = vmatprep.subr.bf16.mxu0 %v5915_v55  ;;  %4088 = vmatprep.subr.bf16.mxu1 %v5918_v56  ;;  %v6002_v55 = vld [vmem:[%s6637_s12 + $0xc4c] ss:$16 sps:$4 sm:$0xff]   ;;  %v5997_v56 = vld [vmem:[%s6637_s12 + $0xc40] ss:$16 sps:$4 sm:$0xff]  }
 0x1e9   : > { %3761 = vmatpush1.bf16.msra.mxu0 %v5913_v57  ;;  %4089 = vmatpush1.bf16.msra.mxu1 %v5916_v58  ;;  %v6000_v57 = vld [vmem:[%s6637_s12 + $0xc48] ss:$16 sps:$4 sm:$0xff]   ;;  %v6005_v58 = vld [vmem:[%s6637_s12 + $0xc64] ss:$16 sps:$4 sm:$0xff]  }
 0x1ea   : > { %3762 = vmatprep.subr.bf16.mxu0 %v5921_v59  ;;  %4090 = vmatprep.subr.bf16.mxu1 %v5924_v60  ;;  %v6008_v59 = vld [vmem:[%s6637_s12 + $0xc6c] ss:$16 sps:$4 sm:$0xff]   ;;  %v6003_v60 = vld [vmem:[%s6637_s12 + $0xc60] ss:$16 sps:$4 sm:$0xff]  }
 0x1ed   : > { %3763 = vmatpush1.bf16.msra.mxu0 %v5919_v61  ;;  %4091 = vmatpush1.bf16.msra.mxu1 %v5922_v62  ;;  %v6006_v61 = vld [vmem:[%s6637_s12 + $0xc68] ss:$16 sps:$4 sm:$0xff]   ;;  %v6011_v62 = vld [vmem:[%s6637_s12 + $0xc84] ss:$16 sps:$4 sm:$0xff]  }
 0x1ee   : > { %3764 = vmatprep.subr.bf16.mxu0 %v5927_v63  ;;  %4092 = vmatprep.subr.bf16.mxu1 %v5930_v0  ;;  %v6014_v63 = vld [vmem:[%s6637_s12 + $0xc8c] ss:$16 sps:$4 sm:$0xff]   ;;  %v6009_v0 = vld [vmem:[%s6637_s12 + $0xc80] ss:$16 sps:$4 sm:$0xff]  }
 0x1f1   : > { %3765 = vmatpush1.bf16.msra.mxu0 %v5925_v1  ;;  %4093 = vmatpush1.bf16.msra.mxu1 %v5928_v2  ;;  %v6012_v1 = vld [vmem:[%s6637_s12 + $0xc88] ss:$16 sps:$4 sm:$0xff]   ;;  %v6017_v2 = vld [vmem:[%s6637_s12 + $0xca4] ss:$16 sps:$4 sm:$0xff]  }
 0x1f2   : > { %3766 = vmatprep.subr.bf16.mxu0 %v5933_v3  ;;  %4094 = vmatprep.subr.bf16.mxu1 %v5936_v4  ;;  %v6020_v3 = vld [vmem:[%s6637_s12 + $0xcac] ss:$16 sps:$4 sm:$0xff]   ;;  %v6015_v4 = vld [vmem:[%s6637_s12 + $0xca0] ss:$16 sps:$4 sm:$0xff]  }
 0x1f5   : > { %3767 = vmatpush1.bf16.msra.mxu0 %v5931_v5  ;;  %4095 = vmatpush1.bf16.msra.mxu1 %v5934_v6  ;;  %v6018_v5 = vld [vmem:[%s6637_s12 + $0xca8] ss:$16 sps:$4 sm:$0xff]   ;;  %v6023_v6 = vld [vmem:[%s6637_s12 + $0xcc4] ss:$16 sps:$4 sm:$0xff]  }
 0x1f6   : > { %3768 = vmatprep.subr.bf16.mxu0 %v5939_v7  ;;  %4096 = vmatprep.subr.bf16.mxu1 %v5942_v8  ;;  %v6026_v7 = vld [vmem:[%s6637_s12 + $0xccc] ss:$16 sps:$4 sm:$0xff]   ;;  %v6021_v8 = vld [vmem:[%s6637_s12 + $0xcc0] ss:$16 sps:$4 sm:$0xff]  }
 0x1f9   : > { %3769 = vmatpush1.bf16.msra.mxu0 %v5937_v9  ;;  %4097 = vmatpush1.bf16.msra.mxu1 %v5940_v10  ;;  %v6024_v9 = vld [vmem:[%s6637_s12 + $0xcc8] ss:$16 sps:$4 sm:$0xff]   ;;  %v6029_v10 = vld [vmem:[%s6637_s12 + $0xce4] ss:$16 sps:$4 sm:$0xff]  }
 0x1fa   : > { %3770 = vmatprep.subr.bf16.mxu0 %v5945_v11  ;;  %4098 = vmatprep.subr.bf16.mxu1 %v5948_v12  ;;  %v6032_v11 = vld [vmem:[%s6637_s12 + $0xcec] ss:$16 sps:$4 sm:$0xff]   ;;  %v6027_v12 = vld [vmem:[%s6637_s12 + $0xce0] ss:$16 sps:$4 sm:$0xff]  }
 0x1fd   : > { %3771 = vmatpush1.bf16.msra.mxu0 %v5943_v13  ;;  %4099 = vmatpush1.bf16.msra.mxu1 %v5946_v15  ;;  %v6030_v13 = vld [vmem:[%s6637_s12 + $0xce8] ss:$16 sps:$4 sm:$0xff]   ;;  %v6035_v15 = vld [vmem:[%s6637_s12 + $0xd04] ss:$16 sps:$4 sm:$0xff]  }
 0x1fe   : > { %3772 = vmatprep.subr.bf16.mxu0 %v5951_v17  ;;  %4100 = vmatprep.subr.bf16.mxu1 %v5954_v53  ;;  %v6038_v17 = vld [vmem:[%s6637_s12 + $0xd0c] ss:$16 sps:$4 sm:$0xff]   ;;  %v6033_v53 = vld [vmem:[%s6637_s12 + $0xd00] ss:$16 sps:$4 sm:$0xff]  }
 0x201   : > { %3773 = vmatpush1.bf16.msra.mxu0 %v5949_v18  ;;  %4101 = vmatpush1.bf16.msra.mxu1 %v5952_v19  ;;  %v6036_v18 = vld [vmem:[%s6637_s12 + $0xd08] ss:$16 sps:$4 sm:$0xff]   ;;  %v6041_v19 = vld [vmem:[%s6637_s12 + $0xd24] ss:$16 sps:$4 sm:$0xff]  }
 0x202   : > { %3774 = vmatprep.subr.bf16.mxu0 %v5957_v20  ;;  %4102 = vmatprep.subr.bf16.mxu1 %v5960_v21  ;;  %v6044_v20 = vld [vmem:[%s6637_s12 + $0xd2c] ss:$16 sps:$4 sm:$0xff]   ;;  %v6039_v21 = vld [vmem:[%s6637_s12 + $0xd20] ss:$16 sps:$4 sm:$0xff]  }
 0x205   : > { %3775 = vmatpush1.bf16.msra.mxu0 %v5955_v23  ;;  %4103 = vmatpush1.bf16.msra.mxu1 %v5958_v24  ;;  %v6042_v23 = vld [vmem:[%s6637_s12 + $0xd28] ss:$16 sps:$4 sm:$0xff]   ;;  %v6047_v24 = vld [vmem:[%s6637_s12 + $0xd44] ss:$16 sps:$4 sm:$0xff]  }
 0x206   : > { %3776 = vmatprep.subr.bf16.mxu0 %v5963_v25  ;;  %4104 = vmatprep.subr.bf16.mxu1 %v5966_v27  ;;  %v6050_v25 = vld [vmem:[%s6637_s12 + $0xd4c] ss:$16 sps:$4 sm:$0xff]   ;;  %v6045_v27 = vld [vmem:[%s6637_s12 + $0xd40] ss:$16 sps:$4 sm:$0xff]  }
 0x209   : > { %3777 = vmatpush1.bf16.msra.mxu0 %v5961_v29  ;;  %4105 = vmatpush1.bf16.msra.mxu1 %v5964_v30  ;;  %v6048_v29 = vld [vmem:[%s6637_s12 + $0xd48] ss:$16 sps:$4 sm:$0xff]   ;;  %v6053_v30 = vld [vmem:[%s6637_s12 + $0xd64] ss:$16 sps:$4 sm:$0xff]  }
 0x20a   : > { %3778 = vmatprep.subr.bf16.mxu0 %v5969_v31  ;;  %4106 = vmatprep.subr.bf16.mxu1 %v5972_v16  ;;  %v6056_v31 = vld [vmem:[%s6637_s12 + $0xd6c] ss:$16 sps:$4 sm:$0xff]   ;;  %v6051_v16 = vld [vmem:[%s6637_s12 + $0xd60] ss:$16 sps:$4 sm:$0xff]  }
 0x20d   : > { %3779 = vmatpush1.bf16.msra.mxu0 %v5967_v32  ;;  %4107 = vmatpush1.bf16.msra.mxu1 %v5970_v33  ;;  %v6054_v32 = vld [vmem:[%s6637_s12 + $0xd68] ss:$16 sps:$4 sm:$0xff]   ;;  %v6059_v33 = vld [vmem:[%s6637_s12 + $0xd84] ss:$16 sps:$4 sm:$0xff]  }
 0x20e   : > { %3780 = vmatprep.subr.bf16.mxu0 %v5975_v34  ;;  %4108 = vmatprep.subr.bf16.mxu1 %v5978_v26  ;;  %v6062_v34 = vld [vmem:[%s6637_s12 + $0xd8c] ss:$16 sps:$4 sm:$0xff]   ;;  %v6057_v26 = vld [vmem:[%s6637_s12 + $0xd80] ss:$16 sps:$4 sm:$0xff]  }
 0x211   : > { %3781 = vmatpush1.bf16.msra.mxu0 %v5973_v36  ;;  %4109 = vmatpush1.bf16.msra.mxu1 %v5976_v14  ;;  %v6065_v36 = vld [vmem:[%s6637_s12 + $0xda4] ss:$16 sps:$4 sm:$0xff]   ;;  %v6068_v14 = vld [vmem:[%s6637_s12 + $0xdac] ss:$16 sps:$4 sm:$0xff]  }
 0x212   : > { %3782 = vmatprep.subr.bf16.mxu0 %v5981_v39  ;;  %4110 = vmatprep.subr.bf16.mxu1 %v5984_v40  ;;  %v6063_v39 = vld [vmem:[%s6637_s12 + $0xda0] ss:$16 sps:$4 sm:$0xff]   ;;  %v6066_v40 = vld [vmem:[%s6637_s12 + $0xda8] ss:$16 sps:$4 sm:$0xff]  }
 0x215   : > { %3783 = vmatpush1.bf16.msra.mxu0 %v5979_v22  ;;  %4111 = vmatpush1.bf16.msra.mxu1 %v5982_v42  ;;  %v6071_v22 = vld [vmem:[%s6637_s12 + $0xdc4] ss:$16 sps:$4 sm:$0xff]   ;;  %v6074_v42 = vld [vmem:[%s6637_s12 + $0xdcc] ss:$16 sps:$4 sm:$0xff]  }
 0x216   : > { %3793 = vmatprep.subr.bf16.mxu0 %v5987_v44  ;;  %4121 = vmatprep.subr.bf16.mxu1 %v5990_v28  ;;  %v6069_v44 = vld [vmem:[%s6637_s12 + $0xdc0] ss:$16 sps:$4 sm:$0xff]   ;;  %v6072_v28 = vld [vmem:[%s6637_s12 + $0xdc8] ss:$16 sps:$4 sm:$0xff]  }
 0x218   : > { %3785 = vmatmul.mubr.bf16.vlgmr.msra.gmra.mrb[0].mxu0 %v967_v46  ;;  %4113 = vmatmul.mubr.bf16.vlgmr.msra.gmra.mrb[0].mxu1 %v967_v46  ;;  %v6080_v46 = vld [vmem:[%s6637_s12 + $0xdec] ss:$16 sps:$4 sm:$0xff]  }
 0x219   : > { %3794 = vmatpush1.bf16.msra.mxu0 %v5985_v47  ;;  %4122 = vmatpush1.bf16.msra.mxu1 %v5988_v37  ;;  %v6075_v47 = vld [vmem:[%s6637_s12 + $0xde0] ss:$16 sps:$4 sm:$0xff]   ;;  %v6078_v37 = vld [vmem:[%s6637_s12 + $0xde8] ss:$16 sps:$4 sm:$0xff]  }
 0x21a   : > { %3795 = vmatprep.subr.bf16.mxu0 %v5993_v48  ;;  %4123 = vmatprep.subr.bf16.mxu1 %v5996_v49  ;;  %v6084_v48 = vld [vmem:[%s6637_s12 + $0xe04] ss:$16 sps:$4 sm:$0xff]   ;;  %v6087_v49 = vld [vmem:[%s6637_s12 + $0xe0c] ss:$16 sps:$4 sm:$0xff]  }
 0x21b   : > { %3825 = vmatprep.mubr.bf16.mxu0 %v7124_v51  ;;  %4153 = vmatprep.mubr.bf16.mxu1 %v7124_v51 }
 0x21d   : > { %3796 = vmatpush1.bf16.msra.mxu0 %v5991_v38  ;;  %4124 = vmatpush1.bf16.msra.mxu1 %v5994_v52  ;;  %v7190_v38 = vrot.slane %v7109_v41, %v6705_v50  ;;  %v6082_v52 = vld [vmem:[%s6637_s12 + $0xe00] ss:$16 sps:$4 sm:$0xff]   ;;  %v6091_v41 = vld [vmem:[%s6637_s12 + $0xe28] ss:$16 sps:$4 sm:$0xff]  }
 0x21e   : > { %3797 = vmatprep.subr.bf16.mxu0 %v5999_v54  ;;  %4125 = vmatprep.subr.bf16.mxu1 %v6002_v55  ;;  %v6085_v54 = vld [vmem:[%s6637_s12 + $0xe08] ss:$16 sps:$4 sm:$0xff]   ;;  %v6090_v55 = vld [vmem:[%s6637_s12 + $0xe24] ss:$16 sps:$4 sm:$0xff]   ;;  %v6088_v50 = vld [vmem:[%s6637_s12 + $0xe20] ss:$16 sps:$4 sm:$0xff]  }
 0x221   : > { %3798 = vmatpush1.bf16.msra.mxu0 %v5997_v56  ;;  %4126 = vmatpush1.bf16.msra.mxu1 %v6000_v57  ;;  %v6093_v56 = vld [vmem:[%s6637_s12 + $0xe2c] ss:$16 sps:$4 sm:$0xff]   ;;  %v970_v57 = vcombine.high %v7124_v51, %v7124_v51  ;;  %v6094_v51 = vld [vmem:[%s6637_s12 + $0xe40] ss:$16 sps:$4 sm:$0xff]  }
 0x222   : > { %3799 = vmatprep.subr.bf16.mxu0 %v6005_v58  ;;  %4127 = vmatprep.subr.bf16.mxu1 %v6008_v59  ;;  %v6096_v58 = vld [vmem:[%s6637_s12 + $0xe44] ss:$16 sps:$4 sm:$0xff]   ;;  %v6099_v59 = vld [vmem:[%s6637_s12 + $0xe4c] ss:$16 sps:$4 sm:$0xff]  }
 0x225   : > { %3800 = vmatpush1.bf16.msra.mxu0 %v6003_v60  ;;  %4128 = vmatpush1.bf16.msra.mxu1 %v6006_v61  ;;  %v6097_v60 = vld [vmem:[%s6637_s12 + $0xe48] ss:$16 sps:$4 sm:$0xff]   ;;  %v6102_v61 = vld [vmem:[%s6637_s12 + $0xe64] ss:$16 sps:$4 sm:$0xff]  }
 0x226   : > { %3801 = vmatprep.subr.bf16.mxu0 %v6011_v62  ;;  %4129 = vmatprep.subr.bf16.mxu1 %v6014_v63  ;;  %v6105_v62 = vld [vmem:[%s6637_s12 + $0xe6c] ss:$16 sps:$4 sm:$0xff]   ;;  %v6100_v63 = vld [vmem:[%s6637_s12 + $0xe60] ss:$16 sps:$4 sm:$0xff]  }
 0x229   : > { %3802 = vmatpush1.bf16.msra.mxu0 %v6009_v0  ;;  %4130 = vmatpush1.bf16.msra.mxu1 %v6012_v1  ;;  %v6103_v0 = vld [vmem:[%s6637_s12 + $0xe68] ss:$16 sps:$4 sm:$0xff]   ;;  %v6108_v1 = vld [vmem:[%s6637_s12 + $0xe84] ss:$16 sps:$4 sm:$0xff]  }
 0x22a   : > { %3803 = vmatprep.subr.bf16.mxu0 %v6017_v2  ;;  %4131 = vmatprep.subr.bf16.mxu1 %v6020_v3  ;;  %v6111_v2 = vld [vmem:[%s6637_s12 + $0xe8c] ss:$16 sps:$4 sm:$0xff]   ;;  %v6106_v3 = vld [vmem:[%s6637_s12 + $0xe80] ss:$16 sps:$4 sm:$0xff]  }
 0x22d   : > { %3804 = vmatpush1.bf16.msra.mxu0 %v6015_v4  ;;  %4132 = vmatpush1.bf16.msra.mxu1 %v6018_v5  ;;  %v6109_v4 = vld [vmem:[%s6637_s12 + $0xe88] ss:$16 sps:$4 sm:$0xff]   ;;  %v6114_v5 = vld [vmem:[%s6637_s12 + $0xea4] ss:$16 sps:$4 sm:$0xff]  }
 0x22e   : > { %3805 = vmatprep.subr.bf16.mxu0 %v6023_v6  ;;  %4133 = vmatprep.subr.bf16.mxu1 %v6026_v7  ;;  %v6117_v6 = vld [vmem:[%s6637_s12 + $0xeac] ss:$16 sps:$4 sm:$0xff]   ;;  %v6112_v7 = vld [vmem:[%s6637_s12 + $0xea0] ss:$16 sps:$4 sm:$0xff]  }
 0x231   : > { %3806 = vmatpush1.bf16.msra.mxu0 %v6021_v8  ;;  %4134 = vmatpush1.bf16.msra.mxu1 %v6024_v9  ;;  %v6115_v8 = vld [vmem:[%s6637_s12 + $0xea8] ss:$16 sps:$4 sm:$0xff]   ;;  %v6120_v9 = vld [vmem:[%s6637_s12 + $0xec4] ss:$16 sps:$4 sm:$0xff]  }
 0x232   : > { %3807 = vmatprep.subr.bf16.mxu0 %v6029_v10  ;;  %4135 = vmatprep.subr.bf16.mxu1 %v6032_v11  ;;  %v6123_v10 = vld [vmem:[%s6637_s12 + $0xecc] ss:$16 sps:$4 sm:$0xff]   ;;  %v6118_v11 = vld [vmem:[%s6637_s12 + $0xec0] ss:$16 sps:$4 sm:$0xff]  }
 0x235   : > { %3808 = vmatpush1.bf16.msra.mxu0 %v6027_v12  ;;  %4136 = vmatpush1.bf16.msra.mxu1 %v6030_v13  ;;  %v6121_v12 = vld [vmem:[%s6637_s12 + $0xec8] ss:$16 sps:$4 sm:$0xff]   ;;  %v6126_v13 = vld [vmem:[%s6637_s12 + $0xee4] ss:$16 sps:$4 sm:$0xff]  }
 0x236   : > { %3809 = vmatprep.subr.bf16.mxu0 %v6035_v15  ;;  %4137 = vmatprep.subr.bf16.mxu1 %v6038_v17  ;;  %v6129_v15 = vld [vmem:[%s6637_s12 + $0xeec] ss:$16 sps:$4 sm:$0xff]   ;;  %v6124_v17 = vld [vmem:[%s6637_s12 + $0xee0] ss:$16 sps:$4 sm:$0xff]  }
 0x239   : > { %3810 = vmatpush1.bf16.msra.mxu0 %v6033_v53  ;;  %4138 = vmatpush1.bf16.msra.mxu1 %v6036_v18  ;;  %v6127_v53 = vld [vmem:[%s6637_s12 + $0xee8] ss:$16 sps:$4 sm:$0xff]   ;;  %v6132_v18 = vld [vmem:[%s6637_s12 + $0xf04] ss:$16 sps:$4 sm:$0xff]  }
 0x23a   : > { %3811 = vmatprep.subr.bf16.mxu0 %v6041_v19  ;;  %4139 = vmatprep.subr.bf16.mxu1 %v6044_v20  ;;  %v6135_v19 = vld [vmem:[%s6637_s12 + $0xf0c] ss:$16 sps:$4 sm:$0xff]   ;;  %v6130_v20 = vld [vmem:[%s6637_s12 + $0xf00] ss:$16 sps:$4 sm:$0xff]  }
 0x23d   : > { %3812 = vmatpush1.bf16.msra.mxu0 %v6039_v21  ;;  %4140 = vmatpush1.bf16.msra.mxu1 %v6042_v23  ;;  %v6133_v21 = vld [vmem:[%s6637_s12 + $0xf08] ss:$16 sps:$4 sm:$0xff]   ;;  %v6138_v23 = vld [vmem:[%s6637_s12 + $0xf24] ss:$16 sps:$4 sm:$0xff]  }
 0x23e   : > { %3813 = vmatprep.subr.bf16.mxu0 %v6047_v24  ;;  %4141 = vmatprep.subr.bf16.mxu1 %v6050_v25  ;;  %v6141_v24 = vld [vmem:[%s6637_s12 + $0xf2c] ss:$16 sps:$4 sm:$0xff]   ;;  %v6136_v25 = vld [vmem:[%s6637_s12 + $0xf20] ss:$16 sps:$4 sm:$0xff]  }
 0x241   : > { %3814 = vmatpush1.bf16.msra.mxu0 %v6045_v27  ;;  %4142 = vmatpush1.bf16.msra.mxu1 %v6048_v29  ;;  %v6139_v27 = vld [vmem:[%s6637_s12 + $0xf28] ss:$16 sps:$4 sm:$0xff]   ;;  %v6144_v29 = vld [vmem:[%s6637_s12 + $0xf44] ss:$16 sps:$4 sm:$0xff]  }
 0x242   : > { %3815 = vmatprep.subr.bf16.mxu0 %v6053_v30  ;;  %4143 = vmatprep.subr.bf16.mxu1 %v6056_v31  ;;  %v6147_v30 = vld [vmem:[%s6637_s12 + $0xf4c] ss:$16 sps:$4 sm:$0xff]   ;;  %v6142_v31 = vld [vmem:[%s6637_s12 + $0xf40] ss:$16 sps:$4 sm:$0xff]  }
 0x245   : > { %3816 = vmatpush1.bf16.msra.mxu0 %v6051_v16  ;;  %4144 = vmatpush1.bf16.msra.mxu1 %v6054_v32  ;;  %v6145_v16 = vld [vmem:[%s6637_s12 + $0xf48] ss:$16 sps:$4 sm:$0xff]   ;;  %v6150_v32 = vld [vmem:[%s6637_s12 + $0xf64] ss:$16 sps:$4 sm:$0xff]  }
 0x246   : > { %3817 = vmatprep.subr.bf16.mxu0 %v6059_v33  ;;  %4145 = vmatprep.subr.bf16.mxu1 %v6062_v34  ;;  %v6153_v33 = vld [vmem:[%s6637_s12 + $0xf6c] ss:$16 sps:$4 sm:$0xff]   ;;  %v6148_v34 = vld [vmem:[%s6637_s12 + $0xf60] ss:$16 sps:$4 sm:$0xff]  }
 0x249   : > { %3818 = vmatpush1.bf16.msra.mxu0 %v6057_v26  ;;  %4146 = vmatpush1.bf16.msra.mxu1 %v6060_v35  ;;  %v6151_v26 = vld [vmem:[%s6637_s12 + $0xf68] ss:$16 sps:$4 sm:$0xff]   ;;  %v6156_v35 = vld [vmem:[%s6637_s12 + $0xf84] ss:$16 sps:$4 sm:$0xff]  }
 0x24a   : > { %3819 = vmatprep.subr.bf16.mxu0 %v6065_v36  ;;  %4147 = vmatprep.subr.bf16.mxu1 %v6068_v14  ;;  %v6159_v36 = vld [vmem:[%s6637_s12 + $0xf8c] ss:$16 sps:$4 sm:$0xff]   ;;  %v6154_v14 = vld [vmem:[%s6637_s12 + $0xf80] ss:$16 sps:$4 sm:$0xff]  }
 0x24d   : > { %3820 = vmatpush1.bf16.msra.mxu0 %v6063_v39  ;;  %4148 = vmatpush1.bf16.msra.mxu1 %v6066_v40  ;;  %v6157_v39 = vld [vmem:[%s6637_s12 + $0xf88] ss:$16 sps:$4 sm:$0xff]   ;;  %v6162_v40 = vld [vmem:[%s6637_s12 + $0xfa4] ss:$16 sps:$4 sm:$0xff]  }
 0x24e   : > { %3821 = vmatprep.subr.bf16.mxu0 %v6071_v22  ;;  %4149 = vmatprep.subr.bf16.mxu1 %v6074_v42  ;;  %v6165_v22 = vld [vmem:[%s6637_s12 + $0xfac] ss:$16 sps:$4 sm:$0xff]   ;;  %v6160_v42 = vld [vmem:[%s6637_s12 + $0xfa0] ss:$16 sps:$4 sm:$0xff]  }
 0x251   : > { %3822 = vmatpush1.bf16.msra.mxu0 %v6069_v44  ;;  %4150 = vmatpush1.bf16.msra.mxu1 %v6072_v28  ;;  %v6163_v44 = vld [vmem:[%s6637_s12 + $0xfa8] ss:$16 sps:$4 sm:$0xff]   ;;  %v6168_v28 = vld [vmem:[%s6637_s12 + $0xfc4] ss:$16 sps:$4 sm:$0xff]  }
 0x252   : > { %3823 = vmatprep.subr.bf16.mxu0 %v6077_v45  ;;  %4151 = vmatprep.subr.bf16.mxu1 %v6080_v46  ;;  %v6171_v45 = vld [vmem:[%s6637_s12 + $0xfcc] ss:$16 sps:$4 sm:$0xff]   ;;  %v6166_v46 = vld [vmem:[%s6637_s12 + $0xfc0] ss:$16 sps:$4 sm:$0xff]  }
 0x255   : > { %3824 = vmatpush1.bf16.msra.mxu0 %v6075_v47  ;;  %4152 = vmatpush1.bf16.msra.mxu1 %v6078_v37  ;;  %v6169_v47 = vld [vmem:[%s6637_s12 + $0xfc8] ss:$16 sps:$4 sm:$0xff]   ;;  %v6174_v37 = vld [vmem:[%s6637_s12 + $0xfe4] ss:$16 sps:$4 sm:$0xff]  }
 0x256   : > { %3834 = vmatprep.subr.bf16.mxu0 %v6084_v48  ;;  %4162 = vmatprep.subr.bf16.mxu1 %v6087_v49  ;;  %v6177_v48 = vld [vmem:[%s6637_s12 + $0xfec] ss:$16 sps:$4 sm:$0xff]   ;;  %v6172_v49 = vld [vmem:[%s6637_s12 + $0xfe0] ss:$16 sps:$4 sm:$0xff]  }
 0x258   : > { %3826 = vmatmul.mubr.bf16.vlgmr.msra.gmra.mrb[0].mxu0 %v7190_v38  ;;  %4154 = vmatmul.mubr.bf16.vlgmr.msra.gmra.mrb[0].mxu1 %v7190_v38 }
 0x259   : > { %3835 = vmatpush1.bf16.msra.mxu0 %v6082_v52  ;;  %4163 = vmatpush1.bf16.msra.mxu1 %v6085_v54  ;;  %v6175_v52 = vld [vmem:[%s6637_s12 + $0xfe8] ss:$16 sps:$4 sm:$0xff]  }
 0x25a   : > { %3836 = vmatprep.subr.bf16.mxu0 %v6090_v55  ;;  %4164 = vmatprep.subr.bf16.mxu1 %v6093_v56  ;;  %v6178_v54 = vld [vmem:[%s6650_s30 + $0x40] sm:$0xff]   ;;  %v968_v56 = vcombine.high %v7190_v38, %v7190_v38  ;;  %v6185_v38 = vld [vmem:[%s6650_s30 + $0x88] sm:$0xff]  }
 0x25b   : > { %3866 = vmatprep.mubr.bf16.mxu0 %v970_v57  ;;  %4194 = vmatprep.mubr.bf16.mxu1 %v970_v57  ;;  %v6179_v55 = vld [vmem:[%s6650_s30 + $0xc0] sm:$0xff]  }
 0x25c   : > { %v6180_v57 = vld [vmem:[%s6650_s30] sm:$0xff]  }
 0x25d   : > { %3837 = vmatpush1.bf16.msra.mxu0 %v6088_v50  ;;  %4165 = vmatpush1.bf16.msra.mxu1 %v6091_v41  ;;  %v6181_v50 = vld [vmem:[%s6650_s30 + $0x80] sm:$0xff]   ;;  %v6182_v41 = vld [vmem:[%s6650_s30 + $0x48] sm:$0xff]  }
 0x25e   : > { %3838 = vmatprep.subr.bf16.mxu0 %v6096_v58  ;;  %4166 = vmatprep.subr.bf16.mxu1 %v6099_v59  ;;  %v6183_v58 = vld [vmem:[%s6650_s30 + $0xc8] sm:$0xff]  }
 0x25f   : > { %v6184_v59 = vld [vmem:[%s6650_s30 + $0x8] sm:$0xff]  }
 0x261   : > { %3839 = vmatpush1.bf16.msra.mxu0 %v6094_v51  ;;  %4167 = vmatpush1.bf16.msra.mxu1 %v6097_v60  ;;  %v6186_v51 = vld [vmem:[%s6650_s30 + $0x50] sm:$0xff]  }
 0x262   : > { %3840 = vmatprep.subr.bf16.mxu0 %v6102_v61  ;;  %4168 = vmatprep.subr.bf16.mxu1 %v6105_v62  ;;  %v6187_v60 = vld [vmem:[%s6650_s30 + $0xd0] sm:$0xff]  }
 0x263   : > { %v6188_v61 = vld [vmem:[%s6650_s30 + $0x10] sm:$0xff]  }
 0x264   : > { %v6189_v62 = vld [vmem:[%s6650_s30 + $0x90] sm:$0xff]  }
 0x265   : > { %3841 = vmatpush1.bf16.msra.mxu0 %v6100_v63  ;;  %4169 = vmatpush1.bf16.msra.mxu1 %v6103_v0  ;;  %v6190_v63 = vld [vmem:[%s6650_s30 + $0x58] sm:$0xff]  }
 0x266   : > { %3842 = vmatprep.subr.bf16.mxu0 %v6108_v1  ;;  %4170 = vmatprep.subr.bf16.mxu1 %v6111_v2  ;;  %v6191_v0 = vld [vmem:[%s6650_s30 + $0xd8] sm:$0xff]  }
 0x267   : > { %v6192_v1 = vld [vmem:[%s6650_s30 + $0x18] sm:$0xff]  }
 0x268   : > { %v6193_v2 = vld [vmem:[%s6650_s30 + $0x98] sm:$0xff]  }
 0x269   : > { %3843 = vmatpush1.bf16.msra.mxu0 %v6106_v3  ;;  %4171 = vmatpush1.bf16.msra.mxu1 %v6109_v4  ;;  %v6194_v3 = vld [vmem:[%s6650_s30 + $0x60] sm:$0xff]  }
 0x26a   : > { %3844 = vmatprep.subr.bf16.mxu0 %v6114_v5  ;;  %4172 = vmatprep.subr.bf16.mxu1 %v6117_v6  ;;  %v6195_v4 = vld [vmem:[%s6650_s30 + $0xe0] sm:$0xff]  }
 0x26b   : > { %v6196_v5 = vld [vmem:[%s6650_s30 + $0x20] sm:$0xff]  }
 0x26c   : > { %v6197_v6 = vld [vmem:[%s6650_s30 + $0xa0] sm:$0xff]  }
 0x26d   : > { %3845 = vmatpush1.bf16.msra.mxu0 %v6112_v7  ;;  %4173 = vmatpush1.bf16.msra.mxu1 %v6115_v8  ;;  %v6198_v7 = vld [vmem:[%s6650_s30 + $0x68] sm:$0xff]  }
 0x26e   : > { %3846 = vmatprep.subr.bf16.mxu0 %v6120_v9  ;;  %4174 = vmatprep.subr.bf16.mxu1 %v6123_v10  ;;  %v6199_v8 = vld [vmem:[%s6650_s30 + $0xe8] sm:$0xff]  }
 0x26f   : > { %v6200_v9 = vld [vmem:[%s6650_s30 + $0x28] sm:$0xff]  }
 0x270   : > { %v6201_v10 = vld [vmem:[%s6650_s30 + $0xa8] sm:$0xff]  }
 0x271   : > { %3847 = vmatpush1.bf16.msra.mxu0 %v6118_v11  ;;  %4175 = vmatpush1.bf16.msra.mxu1 %v6121_v12  ;;  %v6202_v11 = vld [vmem:[%s6650_s30 + $0x70] sm:$0xff]  }
 0x272   : > { %3848 = vmatprep.subr.bf16.mxu0 %v6126_v13  ;;  %4176 = vmatprep.subr.bf16.mxu1 %v6129_v15  ;;  %v6203_v12 = vld [vmem:[%s6650_s30 + $0xf0] sm:$0xff]  }
 0x273   : > { %v6204_v13 = vld [vmem:[%s6650_s30 + $0x30] sm:$0xff]  }
 0x274   : > { %v6205_v15 = vld [vmem:[%s6650_s30 + $0xb0] sm:$0xff]  }
 0x275   : > { %3849 = vmatpush1.bf16.msra.mxu0 %v6124_v17  ;;  %4177 = vmatpush1.bf16.msra.mxu1 %v6127_v53  ;;  %v6206_v17 = vld [vmem:[%s6650_s30 + $0x78] sm:$0xff]  }
 0x276   : > { %3850 = vmatprep.subr.bf16.mxu0 %v6132_v18  ;;  %4178 = vmatprep.subr.bf16.mxu1 %v6135_v19  ;;  %v6207_v53 = vld [vmem:[%s6650_s30 + $0xf8] sm:$0xff]  }
 0x277   : > { %v6208_v18 = vld [vmem:[%s6650_s30 + $0x38] sm:$0xff]  }
 0x278   : > { %v6209_v19 = vld [vmem:[%s6650_s30 + $0xb8] sm:$0xff]  }
 0x279   : > { %3851 = vmatpush1.bf16.msra.mxu0 %v6130_v20  ;;  %4179 = vmatpush1.bf16.msra.mxu1 %v6133_v21  ;;  %v853_v20 = vsub.s32 0, %v6697_v43  ;;  %v861_v21 = vsub.s32 2, %v6697_v43 }
 0x27a   : > { %3852 = vmatprep.subr.bf16.mxu0 %v6138_v23  ;;  %4180 = vmatprep.subr.bf16.mxu1 %v6141_v24  ;;  %v849_v23 = vld [vmem:[%s6644_s18] sm:$0xf]  ;;  %v857_v24 = vsub.s32 1, %v6697_v43 }
 0x27d   : > { %3853 = vmatpush1.bf16.msra.mxu0 %v6136_v25  ;;  %4181 = vmatpush1.bf16.msra.mxu1 %v6139_v27  ;;  %v865_v25 = vsub.s32 3, %v6697_v43  ;;  %v854_v27 = vrot.slane %v849_v23, %v853_v20 }
 0x27e   : > { %3854 = vmatprep.subr.bf16.mxu0 %v6144_v29  ;;  %4182 = vmatprep.subr.bf16.mxu1 %v6147_v30  ;;  %v862_v29 = vrot.slane %v849_v23, %v861_v21  ;;  %v858_v30 = vrot.slane %v849_v23, %v857_v24 }
 0x281   : > { %3855 = vmatpush1.bf16.msra.mxu0 %v6142_v31  ;;  %4183 = vmatpush1.bf16.msra.mxu1 %v6145_v16  ;;  %v866_v31 = vrot.slane %v849_v23, %v865_v25 }
 0x282   : > { %3856 = vmatprep.subr.bf16.mxu0 %v6150_v32  ;;  %4184 = vmatprep.subr.bf16.mxu1 %v6153_v33 }
 0x285   : > { %3857 = vmatpush1.bf16.msra.mxu0 %v6148_v34  ;;  %4185 = vmatpush1.bf16.msra.mxu1 %v6151_v26 }
 0x286   : > { %3858 = vmatprep.subr.bf16.mxu0 %v6156_v35  ;;  %4186 = vmatprep.subr.bf16.mxu1 %v6159_v36 }
 0x289   : > { %3859 = vmatpush1.bf16.msra.mxu0 %v6154_v14  ;;  %4187 = vmatpush1.bf16.msra.mxu1 %v6157_v39 }
 0x28a   : > { %3860 = vmatprep.subr.bf16.mxu0 %v6162_v40  ;;  %4188 = vmatprep.subr.bf16.mxu1 %v6165_v22 }
 0x28d   : > { %3861 = vmatpush1.bf16.msra.mxu0 %v6160_v42  ;;  %4189 = vmatpush1.bf16.msra.mxu1 %v6163_v44 }
 0x28e   : > { %3862 = vmatprep.subr.bf16.mxu0 %v6168_v28  ;;  %4190 = vmatprep.subr.bf16.mxu1 %v6171_v45 }
 0x291   : > { %3863 = vmatpush1.bf16.msra.mxu0 %v6166_v46  ;;  %4191 = vmatpush1.bf16.msra.mxu1 %v6169_v47 }
 0x292   : > { %3864 = vmatprep.subr.bf16.mxu0 %v6174_v37  ;;  %4192 = vmatprep.subr.bf16.mxu1 %v6177_v48 }
 0x295   : > { %3865 = vmatpush1.bf16.msra.mxu0 %v6172_v49  ;;  %4193 = vmatpush1.bf16.msra.mxu1 %v6175_v52 }
 0x296   : > { %5231 = vmatprep.subr.bf16.mxu0 %v6178_v54  ;;  %5253 = vmatprep.subr.bf16.mxu1 %v6179_v55 }
 0x298   : > { %3867 = vmatmul.mubr.bf16.vlgmr.msra.gmra.mrb[0].mxu0 %v968_v56  ;;  %4195 = vmatmul.mubr.bf16.vlgmr.msra.gmra.mrb[0].mxu1 %v968_v56 }
 0x299   : > { %5232 = vmatpush3.bf16.msra.mxu0 %v6180_v57  ;;  %5254 = vmatpush3.bf16.msra.mxu1 %v6181_v50 }
 0x29a   : > { %5233 = vmatprep.subr.bf16.mxu0 %v6182_v41  ;;  %5255 = vmatprep.subr.bf16.mxu1 %v6183_v58 }
 0x29d   : > { %5234 = vmatpush3.bf16.msra.mxu0 %v6184_v59  ;;  %5256 = vmatpush3.bf16.msra.mxu1 %v6185_v38  ;;  %v4207_v38 = vld [vmem:[#allocation10] sm:$0x3] }
 0x29e   : > { %5235 = vmatprep.subr.bf16.mxu0 %v6186_v51  ;;  %5257 = vmatprep.subr.bf16.mxu1 %v6187_v60 }
 0x2a1   : > { %5236 = vmatpush3.bf16.msra.mxu0 %v6188_v61  ;;  %5258 = vmatpush3.bf16.msra.mxu1 %v6189_v62 }
 0x2a2   : > { %5237 = vmatprep.subr.bf16.mxu0 %v6190_v63  ;;  %5259 = vmatprep.subr.bf16.mxu1 %v6191_v0 }
 0x2a5   : > { %5238 = vmatpush3.bf16.msra.mxu0 %v6192_v1  ;;  %5260 = vmatpush3.bf16.msra.mxu1 %v6193_v2 }
 0x2a6   : > { %5239 = vmatprep.subr.bf16.mxu0 %v6194_v3  ;;  %5261 = vmatprep.subr.bf16.mxu1 %v6195_v4 }
 0x2a9   : > { %5240 = vmatpush3.bf16.msra.mxu0 %v6196_v5  ;;  %5262 = vmatpush3.bf16.msra.mxu1 %v6197_v6 }
 0x2aa   : > { %5241 = vmatprep.subr.bf16.mxu0 %v6198_v7  ;;  %5263 = vmatprep.subr.bf16.mxu1 %v6199_v8 }
 0x2ad   : > { %5242 = vmatpush3.bf16.msra.mxu0 %v6200_v9  ;;  %5264 = vmatpush3.bf16.msra.mxu1 %v6201_v10 }
 0x2ae   : > { %5243 = vmatprep.subr.bf16.mxu0 %v6202_v11  ;;  %5265 = vmatprep.subr.bf16.mxu1 %v6203_v12 }
 0x2b1   : > { %5244 = vmatpush3.bf16.msra.mxu0 %v6204_v13  ;;  %5266 = vmatpush3.bf16.msra.mxu1 %v6205_v15 }
 0x2b2   : > { %5245 = vmatprep.subr.bf16.mxu0 %v6206_v17  ;;  %5267 = vmatprep.subr.bf16.mxu1 %v6207_v53 }
 0x2b5   : > { %5246 = vmatpush3.bf16.msra.mxu0 %v6208_v18  ;;  %5268 = vmatpush3.bf16.msra.mxu1 %v6209_v19 }
 0x36b   : > { %v3868_v16 = vpop.f32.mrb[0].mxu0  ;;  %v4196_v32 = vpop.f32.mrb[0].mxu1 }
 0x36c   : > { %v5275_v33 = vadd.f32 %v3868_v16, %v854_v27  ;;  %v5277_v34 = vadd.f32 %v4196_v32, %v862_v29  ;;  %v3870_v26 = vpop.f32.mrb[1].mxu0  ;;  %v4198_v35 = vpop.f32.mrb[1].mxu1 }
 0x36d   : > { %v5276_v36 = vadd.f32 %v3870_v26, %v858_v30  ;;  %v5278_v14 = vadd.f32 %v4198_v35, %v866_v31  ;;  %v3872_v39 = vpop.f32.mrb[2].mxu0  ;;  %v4200_v40 = vpop.f32.mrb[2].mxu1 }
 0x36e   : > { %v4203_v22 = vmax.f32 %v5275_v33, 0.0  ;;  %v4205_v42 = vmax.f32 %v5277_v34, 0.0  ;;  %v3873_v44 = vpop.f32.mrb[3].mxu0  ;;  %v4201_v28 = vpop.f32.mrb[3].mxu1 }
 0x36f   : > { %v4204_v45 = vmax.f32 %v5276_v36, 0.0  ;;  %v4206_v43 = vmax.f32 %v5278_v14, 0.0 }
 0x370   : > { %v4208_v37 = vpack.c.bf16 %v4203_v22, %v4203_v22  ;;  %v4210_v48 = vpack.c.bf16 %v4205_v42, %v4205_v42 }
 0x371   : > { %v4209_v46 = vpack.c.bf16 %v4204_v45, %v4204_v45  ;;  %v4211_v47 = vpack.c.bf16 %v4206_v43, %v4206_v43 }
 0x373   : > { %4500 = vmatprep.mubr.bf16.mxu0 %v4209_v46  ;;  %4540 = vmatprep.mubr.bf16.mxu1 %v4211_v47 }
 0x374   : > { %4501 = vmatmul.mubr.bf16.vlgmr.msra.gmra.mrb[4].mxu0 %v4208_v37  ;;  %4541 = vmatmul.mubr.bf16.vlgmr.msra.gmra.mrb[4].mxu1 %v4210_v48 }
 0x447   : > { %v5247_v49 = vpop.f32.mrb[4].mxu0  ;;  %v5269_v52 = vpop.f32.mrb[4].mxu1 }
 0x448   : > { %v5248_v54 = vpop.f32.mrb[5].mxu0  ;;  %v5270_v55 = vpop.f32.mrb[5].mxu1 }
 0x449   : > { %v5249_v56 = vadd.f32 %v5248_v54, %v5247_v49  ;;  %v5271_v57 = vadd.f32 %v5270_v55, %v5269_v52  ;;  %v5250_v50 = vpop.f32.mrb[6].mxu0  ;;  %v5272_v41 = vpop.f32.mrb[6].mxu1 }
 0x44a   : > { %v5251_v58 = vpop.f32.mrb[7].mxu0  ;;  %v5273_v59 = vpop.f32.mrb[7].mxu1 }
 0x44b   : > { %v4543_v51 = vadd.f32 %v5271_v57, %v5249_v56 }
 0x44d   : > { %v4548_v60 = vadd.f32 %v4543_v51, %v4207_v38 }
 0x44f   : > { %4549 = vst [vmem:[#allocation10] sm:$0x3] %v4548_v60 }
 0x450   : > { %6341 = shalt.err (!%p6338_p11)
}
 0x451   : > { %s6342_s24 = scalar_lea.hbm %s7338_s5, 32 }
 0x452   : > { %p6343_p12 = scmp.ne.s32.totalorder %s7338_s5, %s6342_s24  ;;  %p6348_p2 = scmp.lt.u32.totalorder %s6342_s24, %s7338_s5 }
 0x454   : > { %p6344_p8 = pnand %p6343_p12, %p5366_p0 }
 0x456   : > { %p6345_p3 = pneg %p6344_p8 }
 0x458   : > { %p6350_p6 = pnand %p6348_p2, %p6345_p3 }
 0x45a   : > { %6353 = shalt.err (!%p6350_p6)
}
 0x45b   : > { %5346 = dma.vmem_to_hbm [thread:$0]  (%p5366_p0), %s4558_s28, 32, %s7338_s5, [#allocation4]  }
 0x45c   : > { %6383 = dma.done.wait (%p5366_p0), [#allocation4], 32  }
 0x45d   : > { %6385 = vsyncadd (%p5366_p0), [#allocation4], 4294967264 }
 0x45e PF: > { %p20_p13 = scmp.ge.s32.totalorder %s6464_s22, 4   ;;  %s7361_s18 = smov %s6392_s19 }
 0x45f   : > { %s7362_s19 = smov %s6396_s20  ;;  %s7363_s20 = smov %s6474_s25 }
 0x460   : > { %s7364_s21 = smov %s6464_s22  ;;  %22 = sbr.rel (!%p20_p13) target bundleno = 9 (0x9), region = 109 }
 0x467   :  { %4570 = vsyncpa [#allocation3], 1 }
 0x468   :  { %4572 = vsyncpa [#allocation3 + $0x1], 1 }
 0x469   :  { %4573 = vsyncpa [#allocation6], 1 }
 0x46a   :  { %4575 = vsyncpa [#allocation6 + $0x1], 1 }
 0x46b   :  { %4576 = vsyncpa [#allocation9], 1 }
 0x46c   :  { %4577 = vsyncpa [#allocation4], 1 }
 0x46d   :  { %4579 = vsyncpa [#allocation4 + $0x1], 1 }

</bundles_post_ra>
